<compile_context>
chip_gen: v7x
topology: tpu7x:2x2x1
jax: 0.10.0
libtpu: 0.0.40
codegen_flags: <defaults>
</compile_context>

<pallas_src>
import jax
import jax.numpy as jnp
from jax import lax
from jax.experimental import pallas as pl
from jax.experimental.pallas import tpu as pltpu


HEADS = 8
SK = 16   # scalar_key_dim
SV = 16   # scalar_value_dim
PK = 4    # point_key_dim
PV = 4    # point_value_dim
DAP = 32  # padded augmented q/k feature dim (16 + 12 + 3 -> 32)
DVP = 32  # padded per-head value dim (16 + 12 -> 32)
EPS = 1e-8
_TILE_M = 2048


def _round_up(x, m):
    return ((x + m - 1) // m) * m


# ----------------------------------------------------------------------------
# Row-tiled pallas_call helper: row inputs tiled over M, weights broadcast.
# ----------------------------------------------------------------------------
def _row_tiled_call(kernel, row_inputs, full_inputs, n_out, tile_m=_TILE_M):
    M = row_inputs[0].shape[0]
    if M <= tile_m:
        tm, grid_m, Mp = M, 1, M
    else:
        tm = tile_m
        grid_m = (M + tm - 1) // tm
        Mp = grid_m * tm
    if Mp != M:
        row_inputs = [jnp.pad(a, ((0, Mp - M), (0, 0))) for a in row_inputs]
    in_specs = [pl.BlockSpec((tm, a.shape[1]), lambda i: (i, 0)) for a in row_inputs]
    in_specs += [pl.BlockSpec(a.shape, lambda i: (0, 0)) for a in full_inputs]
    out = pl.pallas_call(
        kernel,
        out_shape=jax.ShapeDtypeStruct((Mp, n_out), jnp.float32),
        grid=(grid_m,),
        in_specs=in_specs,
        out_specs=pl.BlockSpec((tm, n_out), lambda i: (i, 0)),
        compiler_params=pltpu.CompilerParams(dimension_semantics=("parallel",)),
    )(*row_inputs, *full_inputs)
    return out[:M] if Mp != M else out


# ----------------------------------------------------------------------------
# Small fused row-wise kernels
# ----------------------------------------------------------------------------
def _layernorm(x, g, b):
    mean = jnp.mean(x, axis=-1, keepdims=True)
    var = jnp.mean((x - mean) ** 2, axis=-1, keepdims=True)
    return (x - mean) * lax.rsqrt(var + 1e-5) * g + b


def _linear_kernel(x_ref, w_ref, b_ref, o_ref):
    o_ref[...] = (
        jnp.dot(x_ref[...], w_ref[...], preferred_element_type=jnp.float32)
        + b_ref[...]
    )


def _post_chain_kernel(f_ref, x_ref, wo_ref, bo_ref, g1_ref, be1_ref,
                       w1_ref, b1_ref, w2_ref, b2_ref, w3_ref, b3_ref,
                       g2_ref, be2_ref, wp_ref, bp_ref, o_ref):
    # to_out + residual + LN  ->  FF(x3, ReLU) + residual + LN  ->  out_proj
    x = x_ref[...]
    h = (jnp.dot(f_ref[...], wo_ref[...], preferred_element_type=jnp.float32)
         + bo_ref[...] + x)
    h = _layernorm(h, g1_ref[...], be1_ref[...])
    y = jnp.maximum(
        jnp.dot(h, w1_ref[...], preferred_element_type=jnp.float32) + b1_ref[...], 0.0)
    y = jnp.maximum(
        jnp.dot(y, w2_ref[...], preferred_element_type=jnp.float32) + b2_ref[...], 0.0)
    y = jnp.dot(y, w3_ref[...], preferred_element_type=jnp.float32) + b3_ref[...] + h
    y = _layernorm(y, g2_ref[...], be2_ref[...])
    o_ref[...] = (jnp.dot(y, wp_ref[...], preferred_element_type=jnp.float32)
                  + bp_ref[...])


def linear(x, w, b=None):
    """y = x @ w + b via a row-tiled Pallas kernel. x: (..., K), w: (K, N)."""
    K, N = w.shape
    orig = x.shape
    x2 = x.reshape(-1, K).astype(jnp.float32)
    if b is None:
        b = jnp.zeros((N,), jnp.float32)
    out = _row_tiled_call(
        _linear_kernel, [x2],
        [w.astype(jnp.float32), b.reshape(1, N).astype(jnp.float32)], N)
    return out.reshape(orig[:-1] + (N,))


# ----------------------------------------------------------------------------
# Invariant-point-attention core kernel
# ----------------------------------------------------------------------------
def _ipa_vmem_bytes(tq, npd, c):
    h = HEADS
    qaw = tq * h * h * DAP * 4
    kat = h * DAP * npd * 4
    vw = npd * h * DVP * 2
    pr = tq * npd * c * 2
    out = tq * (h * DVP + h * c) * 4
    small = h * c * 2 + h * h * DVP * 4 + h * h * c * 4 + c * h * c * 4
    inner = (tq * h * npd * 4 * 3          # logits / bias / attn (f32)
             + tq * h * npd * 2            # bf16 probabilities
             + tq * h * h * DVP * 4 * 2    # osv_full / oprep
             + out)
    return 2 * (qaw + kat + vw + pr + out + small) + inner


def _choose_tq(n, c):
    if n <= 128:
        return _round_up(max(n, 8), 8)
    for tq in (128, 64, 32, 16):
        if _ipa_vmem_bytes(tq, _round_up(n, tq), c) <= 36 * 1024 * 1024:
            return tq
    return 8


def _ipa_attention_pallas(qaw, kat, vwide, pair_b, wpt, n, tq):
    """Runs the fused IPA attention core.

    qaw   : (B, Np*H, H*DAP) f32   block-diagonal-expanded augmented queries
    kat   : (B, H*DAP, Np)   f32   head-folded augmented keys (transposed)
    vwide : (B, Np, H*DVP)   bf16  head-folded (scalar|point|pad) values
    pair_b: (B, Np, Np, C)   bf16  pairwise representation
    wpt   : (H, C)           bf16  pre-scaled pairwise-bias projection
    Returns (B, Np, H*DVP + H*C) f32 — lane-dense per-position feature slab.
    """
    b = qaw.shape[0]
    npd = kat.shape[2]
    c = pair_b.shape[-1]
    h = HEADS
    dv = h * DVP
    dp = h * c
    n_out = dv + dp
    grid_q = npd // tq

    # small constants (head-block masks + per-head lane replication matrix)
    blkv = (jnp.arange(dv)[None, :] // DVP == jnp.arange(h)[:, None]).astype(jnp.float32)
    blkp = (jnp.arange(dp)[None, :] // c == jnp.arange(h)[:, None]).astype(jnp.float32)
    rep = (jnp.arange(dp)[None, :] % c == jnp.arange(c)[:, None]).astype(jnp.float32)

    def kernel(qaw_ref, kat_ref, vw_ref, pair_ref, wpt_ref,
               blkv_ref, blkp_ref, rep_ref, o_ref):
        qaw_t = qaw_ref[0]          # (tq*h, h*DAP) f32
        kat_t = kat_ref[0]          # (h*DAP, npd)  f32
        vw_t = vw_ref[0]            # (npd, dv)     bf16
        pair_t = pair_ref[0]        # (tq, npd, c)  bf16

        # scalar + point-distance logits (+ per-head constants) in one 2D MXU matmul
        logits = jnp.dot(qaw_t, kat_t, preferred_element_type=jnp.float32)  # (tq*h, npd)

        # pairwise-repr bias, computed from the resident pair tile (no HBM round trip)
        wptb = jnp.broadcast_to(wpt_ref[...][None], (tq, h, c))
        bias = jnp.einsum("ihc,ijc->ihj", wptb, pair_t,
                          preferred_element_type=jnp.float32)               # (tq, h, npd)
        logits = logits + bias.reshape(tq * h, npd)

        if npd != n:   # mask padded keys (static)
            col = lax.broadcasted_iota(jnp.int32, (1, npd), 1)
            logits = logits + jnp.where(col < n, 0.0, -1e30).astype(jnp.float32)

        # softmax over keys
        m = jnp.max(logits, axis=-1, keepdims=True)
        e = jnp.exp(logits - m)
        s = jnp.sum(e, axis=-1, keepdims=True)
        attn = e * pl.reciprocal(s, approx=True)                            # (tq*h, npd)
        p16 = attn.astype(jnp.bfloat16)

        # scalar + point value aggregation for all heads at once, then merge the
        # per-head diagonal block into dense lanes (mask + sublane reduce).
        osv_full = jnp.dot(p16, vw_t, preferred_element_type=jnp.float32)   # (tq*h, dv)
        osv = jnp.sum(osv_full.reshape(tq, h, dv) * blkv_ref[...][None], axis=1)

        # pairwise-repr aggregation: per-query batched MXU contraction, then the same
        # replicate + mask + reduce head->lane merge.
        opair = jnp.einsum("ihj,ijc->ihc", p16.reshape(tq, h, npd), pair_t,
                           preferred_element_type=jnp.float32)              # (tq, h, c)
        oprep = jnp.dot(opair.reshape(tq * h, c), rep_ref[...],
                        preferred_element_type=jnp.float32)                 # (tq*h, dp)
        opair_d = jnp.sum(oprep.reshape(tq, h, dp) * blkp_ref[...][None], axis=1)

        o_ref[0] = jnp.concatenate([osv, opair_d], axis=-1)                 # (tq, 512)

    est = _ipa_vmem_bytes(tq, npd, c)
    vmem_limit = int(min(100 * 1024 * 1024, max(32 * 1024 * 1024, est + 12 * 1024 * 1024)))

    return pl.pallas_call(
        kernel,
        out_shape=jax.ShapeDtypeStruct((b, npd, n_out), jnp.float32),
        grid=(b, grid_q),
        in_specs=[
            pl.BlockSpec((1, tq * h, h * DAP), lambda bi, qi: (bi, qi, 0)),
            pl.BlockSpec((1, h * DAP, npd), lambda bi, qi: (bi, 0, 0)),
            pl.BlockSpec((1, npd, dv), lambda bi, qi: (bi, 0, 0)),
            pl.BlockSpec((1, tq, npd, c), lambda bi, qi: (bi, qi, 0, 0)),
            pl.BlockSpec((h, c), lambda bi, qi: (0, 0)),
            pl.BlockSpec((h, dv), lambda bi, qi: (0, 0)),
            pl.BlockSpec((h, dp), lambda bi, qi: (0, 0)),
            pl.BlockSpec((c, dp), lambda bi, qi: (0, 0)),
        ],
        out_specs=pl.BlockSpec((1, tq, n_out), lambda bi, qi: (bi, qi, 0)),
        compiler_params=pltpu.CompilerParams(
            dimension_semantics=("parallel", "parallel"),
            vmem_limit_bytes=vmem_limit,
        ),
    )(qaw, kat, vwide, pair_b, wpt, blkv, blkp, rep)


# ----------------------------------------------------------------------------
# Quaternion helpers (plain JAX glue — elementwise)
# ----------------------------------------------------------------------------
def quaternion_to_matrix(q):
    r, i, j, k = q[..., 0], q[..., 1], q[..., 2], q[..., 3]
    two_s = 2.0 / jnp.sum(q * q, axis=-1)
    o = jnp.stack(
        [
            1 - two_s * (j * j + k * k), two_s * (i * j - k * r), two_s * (i * k + j * r),
            two_s * (i * j + k * r), 1 - two_s * (i * i + k * k), two_s * (j * k - i * r),
            two_s * (i * k - j * r), two_s * (j * k + i * r), 1 - two_s * (i * i + j * j),
        ],
        axis=-1,
    )
    return o.reshape(q.shape[:-1] + (3, 3))


def quaternion_raw_multiply(a, b):
    aw, ax, ay, az = a[..., 0], a[..., 1], a[..., 2], a[..., 3]
    bw, bx, by, bz = b[..., 0], b[..., 1], b[..., 2], b[..., 3]
    ow = aw * bw - ax * bx - ay * by - az * bz
    ox = aw * bx + ax * bw + ay * bz - az * by
    oy = aw * by - ax * bz + ay * bw + az * bx
    oz = aw * bz + ax * by - ay * bx + az * bw
    return jnp.stack([ow, ox, oy, oz], axis=-1)


# ----------------------------------------------------------------------------
# Model (matches the torch StructureModule / IPABlock forward semantics)
# ----------------------------------------------------------------------------
def invariant_point_attention(params, x, pair, rot, trans):
    b, n, dim = x.shape
    h = HEADS

    # One fused projection matmul for all scalar / point q, k, v.
    w_all = jnp.concatenate(
        [params["to_scalar_q_w"], params["to_scalar_k_w"], params["to_scalar_v_w"],
         params["to_point_q_w"], params["to_point_k_w"], params["to_point_v_w"]],
        axis=1)
    proj = linear(x, w_all)                                        # (b, n, 672)
    sizes = [h * SK, h * SK, h * SV, h * PK * 3, h * PK * 3, h * PV * 3]
    offs = [0]
    for s in sizes:
        offs.append(offs[-1] + s)
    qs_f, ks_f, vs_f, qp_f, kp_f, vp_f = [
        proj[..., offs[i]:offs[i + 1]] for i in range(6)]

    qs = qs_f.reshape(b, n, h, SK)
    ks = ks_f.reshape(b, n, h, SK)
    vs = vs_f.reshape(b, n, h, SV)

    def to_global(t, d):    # b n (h d 3) -> b n h d 3, rotated + translated
        p = t.reshape(b, n, h, d, 3)
        return jnp.einsum("bnhdc,bncr->bnhdr", p, rot) + trans[:, :, None, None, :]

    qpg = to_global(qp_f, PK)
    kpg = to_global(kp_f, PK)
    vpg = to_global(vp_f, PV)

    num_logits = 3.0
    scalar_scale = (num_logits * SK) ** -0.5
    point_scale = ((num_logits * PK) * (9.0 / 2.0)) ** -0.5
    pair_scale = num_logits ** -0.5

    # Per-head point weight; strictly negative (softplus > 0), so sqrt(-2*pw) is real.
    pw = -0.5 * point_scale * jax.nn.softplus(params["point_weights"])   # (h,), < 0
    sw = jnp.sqrt(-2.0 * pw)

    # Center q/k global coordinates (distance logits are translation invariant);
    # keeps the |q|^2 / |k|^2 augmentation terms well conditioned.
    center = jnp.mean(trans, axis=1, keepdims=True)[:, :, None, None, :]
    qpgc = qpg - center
    kpgc = kpg - center

    q2 = jnp.sum(qpgc * qpgc, axis=(-1, -2))                       # (b, n, h)
    k2 = jnp.sum(kpgc * kpgc, axis=(-1, -2))
    ones = jnp.ones((b, n, h, 1), jnp.float32)
    zeros = jnp.zeros((b, n, h, 1), jnp.float32)
    pb = jnp.broadcast_to((pair_scale * params["to_pair_b"])[None, None, :, None],
                          (b, n, h, 1))

    # Augmented q/k:  qa . ka = scalar_scale*(qs.ks) + pw*|qp - kp|^2 + pair_bias_b
    qa = jnp.concatenate(
        [qs * scalar_scale,
         (qpgc * sw[None, None, :, None, None]).reshape(b, n, h, 3 * PK),
         (pw[None, None, :] * q2)[..., None], ones, ones, zeros], axis=-1)   # (b,n,h,32)
    ka = jnp.concatenate(
        [ks,
         (kpgc * sw[None, None, :, None, None]).reshape(b, n, h, 3 * PK),
         ones, (pw[None, None, :] * k2)[..., None], pb, zeros], axis=-1)     # (b,n,h,32)

    # Scalar + global-point values, padded to 32 lanes per head.
    vcat = jnp.concatenate(
        [vs, vpg.reshape(b, n, h, 3 * PV),
         jnp.zeros((b, n, h, DVP - SV - 3 * PV), jnp.float32)], axis=-1)     # (b,n,h,32)

    # N-aware padding + tiling.
    tq = _choose_tq(n, dim)
    n_pad = _round_up(n, tq)
    dpad = n_pad - n
    if dpad:
        qa = jnp.pad(qa, ((0, 0), (0, dpad), (0, 0), (0, 0)))
        ka = jnp.pad(ka, ((0, 0), (0, dpad), (0, 0), (0, 0)))
        vcat = jnp.pad(vcat, ((0, 0), (0, dpad), (0, 0), (0, 0)))
        pair = jnp.pad(pair, ((0, 0), (0, dpad), (0, dpad), (0, 0)))

    # Block-diagonal query expansion: one 2D MXU matmul gives all heads' logits
    # directly in query-major (i*H + h) row order.
    eye = jnp.eye(h, dtype=jnp.float32)
    qaw = (qa[:, :, :, None, :] * eye[None, None, :, :, None]).reshape(
        b, n_pad * h, h * DAP).astype(jnp.float32)
    kat = jnp.transpose(ka, (0, 2, 3, 1)).reshape(b, h * DAP, n_pad).astype(jnp.float32)
    vwide = vcat.reshape(b, n_pad, h * DVP).astype(jnp.bfloat16)
    pair_b = pair.astype(jnp.bfloat16)
    wpt = (pair_scale * params["to_pair_w"]).T.astype(jnp.bfloat16)          # (h, dim)

    out = _ipa_attention_pallas(qaw, kat, vwide, pair_b, wpt, n, tq)
    out = out[:, :n]                                                         # (b,n,512)

    osv = out[..., :h * DVP].reshape(b, n, h, DVP)
    res_scalar = osv[..., :SV]                                               # (b,n,h,16)
    res_points_g = osv[..., SV:SV + 3 * PV].reshape(b, n, h, PV, 3)
    opair = out[..., h * DVP:].reshape(b, n, h, dim)

    # Back to the local frame: (pts - trans) @ rot^T, then norms (plain-JAX glue).
    rp = res_points_g - trans[:, :, None, None, :]
    rp_local = jnp.einsum("bnhdc,bnrc->bnhdr", rp, rot)
    rp_norm = jnp.sqrt(jnp.sum(rp_local ** 2, axis=-1) + EPS)

    feats = jnp.concatenate(
        [res_scalar.reshape(b, n, h * SV),
         rp_local.reshape(b, n, h * PV * 3),
         rp_norm.reshape(b, n, h * PV),
         opair.reshape(b, n, h * dim)], axis=-1)                             # (b,n,512)
    return feats


def structure_module(params, target_seq, pair_repr, translations, quaternions):
    b, n, dim = target_seq.shape
    rotations = quaternion_to_matrix(quaternions)

    feats = invariant_point_attention(
        params, target_seq, pair_repr, rotations, translations)

    # Fused post-IPA row-wise chain (to_out + res + LN, FF x3 + res + LN, out_proj).
    f2 = feats.reshape(b * n, -1).astype(jnp.float32)
    x2 = target_seq.reshape(b * n, dim).astype(jnp.float32)
    updates = _row_tiled_call(
        _post_chain_kernel, [f2, x2],
        [params["to_out_w"], params["to_out_b"].reshape(1, -1),
         params["attn_norm_g"].reshape(1, -1), params["attn_norm_b"].reshape(1, -1),
         params["ff_w1"], params["ff_b1"].reshape(1, -1),
         params["ff_w2"], params["ff_b2"].reshape(1, -1),
         params["ff_w3"], params["ff_b3"].reshape(1, -1),
         params["ff_norm_g"].reshape(1, -1), params["ff_norm_b"].reshape(1, -1),
         params["out_proj_w"], params["out_proj_b"].reshape(1, -1)],
        6).reshape(b, n, 6)

    # TODO(synk): quaternion algebra / rigid update stays in plain JAX (elementwise glue).
    quaternion_update = updates[..., :3]
    translation_update = updates[..., 3:]
    quaternion_update = jnp.concatenate(
        [jnp.ones_like(quaternion_update[..., :1]), quaternion_update], axis=-1)
    quaternions = quaternion_raw_multiply(quaternions, quaternion_update)
    translations = translations + jnp.einsum(
        "bnc,bncr->bnr", translation_update, rotations)
    return translations, quaternions


# ----------------------------------------------------------------------------
# Deterministic parameter init (synthetic weights)
# ----------------------------------------------------------------------------
def init_params(key, dim):
    keys = iter(jax.random.split(key, 24))

    def w(shape):
        return jax.random.normal(next(keys), shape, jnp.float32) / jnp.sqrt(
            jnp.float32(shape[0]))

    p = {}
    p["to_scalar_q_w"] = w((dim, HEADS * SK))
    p["to_scalar_k_w"] = w((dim, HEADS * SK))
    p["to_scalar_v_w"] = w((dim, HEADS * SV))
    p["to_point_q_w"] = w((dim, HEADS * PK * 3))
    p["to_point_k_w"] = w((dim, HEADS * PK * 3))
    p["to_point_v_w"] = w((dim, HEADS * PV * 3))
    p["point_weights"] = jnp.full((HEADS,), jnp.log(jnp.exp(1.0) - 1.0), jnp.float32)
    p["to_pair_w"] = w((dim, HEADS))
    p["to_pair_b"] = jnp.zeros((HEADS,), jnp.float32)
    out_in = HEADS * (SV + dim + PV * 4)
    p["to_out_w"] = w((out_in, dim))
    p["to_out_b"] = jnp.zeros((dim,), jnp.float32)
    p["attn_norm_g"] = jnp.ones((dim,), jnp.float32)
    p["attn_norm_b"] = jnp.zeros((dim,), jnp.float32)
    p["ff_norm_g"] = jnp.ones((dim,), jnp.float32)
    p["ff_norm_b"] = jnp.zeros((dim,), jnp.float32)
    p["ff_w1"] = w((dim, dim)); p["ff_b1"] = jnp.zeros((dim,), jnp.float32)
    p["ff_w2"] = w((dim, dim)); p["ff_b2"] = jnp.zeros((dim,), jnp.float32)
    p["ff_w3"] = w((dim, dim)); p["ff_b3"] = jnp.zeros((dim,), jnp.float32)
    p["out_proj_w"] = w((dim, 6))
    p["out_proj_b"] = jnp.zeros((6,), jnp.float32)
    return p


if __name__ == "__main__":
    dim = 32   # channel_size_msa
    b, n = 2, 8

    key = jax.random.PRNGKey(0)
    k_param, k_seq, k_pair, k_trans, k_quat = jax.random.split(key, 5)

    params = init_params(k_param, dim)
    target_seq = jax.random.normal(k_seq, (b, n, dim), jnp.float32)
    pair_repr = jax.random.normal(k_pair, (b, n, n, dim), jnp.float32)
    translations = jax.random.normal(k_trans, (b, n, 3), jnp.float32)
    quaternions = jax.random.normal(k_quat, (b, n, 4), jnp.float32)
    quaternions = quaternions / jnp.linalg.norm(quaternions, axis=-1, keepdims=True)

    run = jax.jit(structure_module)
    trans_out, quat_out = run(params, target_seq, pair_repr, translations, quaternions)
    jax.block_until_ready((trans_out, quat_out))
    assert trans_out.shape == (b, n, 3) and quat_out.shape == (b, n, 4)
    assert bool(jnp.all(jnp.isfinite(trans_out)))
    assert bool(jnp.all(jnp.isfinite(quat_out)))
    print("KERNEL_OK")
</pallas_src>

<mosaic_0001>
module attributes {stable_mosaic.version = 11 : i64} {
  func.func @_linear_kernel(%arg0: i32, %arg1: memref<16x32xf32, #tpu.memory_space<vmem>>, %arg2: memref<32x672xf32, #tpu.memory_space<vmem>>, %arg3: memref<1x672xf32, #tpu.memory_space<vmem>>, %arg4: memref<16x672xf32, #tpu.memory_space<vmem>>) attributes {dimension_semantics = [#tpu.dimension_semantics<parallel>], iteration_bounds = array<i64: 1>, scalar_prefetch = 0 : i64, scratch_operands = 0 : i64, tpu.core_type = #tpu.core_type<tc>, window_params = [{transform_indices = @transform_0, window_bounds = array<i64: 16, 32>}, {pipeline_mode = #tpu.pipeline_mode<synchronous>, transform_indices = @transform_1, window_bounds = array<i64: 32, 672>}, {pipeline_mode = #tpu.pipeline_mode<synchronous>, transform_indices = @transform_2, window_bounds = array<i64: 1, 672>}, {transform_indices = @transform_3, window_bounds = array<i64: 16, 672>}]} {
    %c0 = arith.constant 0 : index
    %c0_0 = arith.constant 0 : index
    %0 = vector.load %arg1[%c0, %c0_0] : memref<16x32xf32, #tpu.memory_space<vmem>>, vector<16x32xf32>
    %c0_1 = arith.constant 0 : index
    %c0_2 = arith.constant 0 : index
    %1 = vector.load %arg2[%c0_1, %c0_2] : memref<32x672xf32, #tpu.memory_space<vmem>>, vector<32x672xf32>
    %cst = arith.constant dense<0.000000e+00> : vector<16x672xf32>
    %2 = tpu.matmul %0, %1, %cst {dimension_numbers = #tpu.dot_dimension_numbers<[1], [0], [0], [1], [0, 0, 1, 1], [], []>} : vector<16x32xf32>, vector<32x672xf32>, vector<16x672xf32> -> vector<16x672xf32>
    %c0_3 = arith.constant 0 : index
    %c0_4 = arith.constant 0 : index
    %3 = vector.load %arg3[%c0_3, %c0_4] : memref<1x672xf32, #tpu.memory_space<vmem>>, vector<1x672xf32>
    %4 = vector.broadcast %3 : vector<1x672xf32> to vector<16x672xf32>
    %5 = arith.addf %2, %4 : vector<16x672xf32>
    %c0_5 = arith.constant 0 : index
    %c0_6 = arith.constant 0 : index
    %6 = vector.load %arg4[%c0_5, %c0_6] : memref<16x672xf32, #tpu.memory_space<vmem>>, vector<16x672xf32>
    tpu.vector_store %arg4[%c0_5, %c0_6], %5 {strides = array<i32>} : memref<16x672xf32, #tpu.memory_space<vmem>>, vector<16x672xf32>,
    return
  }
  func.func @transform_0(%arg0: i32) -> (i32, i32) {
    %c0_i32 = arith.constant 0 : i32
    %c0_i32_0 = arith.constant 0 : i32
    return %arg0, %c0_i32 : i32, i32
  }
  func.func @transform_1(%arg0: i32) -> (i32, i32) {
    %c0_i32 = arith.constant 0 : i32
    %c0_i32_0 = arith.constant 0 : i32
    %c0_i32_1 = arith.constant 0 : i32
    return %c0_i32, %c0_i32_0 : i32, i32
  }
  func.func @transform_2(%arg0: i32) -> (i32, i32) {
    %c0_i32 = arith.constant 0 : i32
    %c0_i32_0 = arith.constant 0 : i32
    %c0_i32_1 = arith.constant 0 : i32
    return %c0_i32, %c0_i32_0 : i32, i32
  }
  func.func @transform_3(%arg0: i32) -> (i32, i32) {
    %c0_i32 = arith.constant 0 : i32
    %c0_i32_0 = arith.constant 0 : i32
    return %arg0, %c0_i32 : i32, i32
  }
}

module attributes {stable_mosaic.version = 11 : i64} {
  func.func @kernel(%arg0: i32, %arg1: i32, %arg2: memref<1x64x256xf32, #tpu.memory_space<vmem>>, %arg3: memref<1x256x8xf32, #tpu.memory_space<vmem>>, %arg4: memref<1x8x256xbf16, #tpu.memory_space<vmem>>, %arg5: memref<1x8x8x32xbf16, #tpu.memory_space<vmem>>, %arg6: memref<8x32xbf16, #tpu.memory_space<vmem>>, %arg7: memref<8x256xf32, #tpu.memory_space<vmem>>, %arg8: memref<8x256xf32, #tpu.memory_space<vmem>>, %arg9: memref<32x256xf32, #tpu.memory_space<vmem>>, %arg10: memref<1x8x512xf32, #tpu.memory_space<vmem>>) attributes {dimension_semantics = [#tpu.dimension_semantics<parallel>, #tpu.dimension_semantics<parallel>], iteration_bounds = array<i64: 2, 1>, scalar_prefetch = 0 : i64, scratch_operands = 0 : i64, tpu.core_type = #tpu.core_type<tc>, window_params = [{transform_indices = @transform_0, window_bounds = array<i64: 1, 64, 256>}, {transform_indices = @transform_1, window_bounds = array<i64: 1, 256, 8>}, {transform_indices = @transform_2, window_bounds = array<i64: 1, 8, 256>}, {transform_indices = @transform_3, window_bounds = array<i64: 1, 8, 8, 32>}, {pipeline_mode = #tpu.pipeline_mode<synchronous>, transform_indices = @transform_4, window_bounds = array<i64: 8, 32>}, {pipeline_mode = #tpu.pipeline_mode<synchronous>, transform_indices = @transform_5, window_bounds = array<i64: 8, 256>}, {pipeline_mode = #tpu.pipeline_mode<synchronous>, transform_indices = @transform_6, window_bounds = array<i64: 8, 256>}, {pipeline_mode = #tpu.pipeline_mode<synchronous>, transform_indices = @transform_7, window_bounds = array<i64: 32, 256>}, {transform_indices = @transform_8, window_bounds = array<i64: 1, 8, 512>}]} {
    %c0 = arith.constant 0 : index
    %c0_0 = arith.constant 0 : index
    %c0_1 = arith.constant 0 : index
    %0 = vector.load %arg2[%c0, %c0_0, %c0_1] : memref<1x64x256xf32, #tpu.memory_space<vmem>>, vector<1x64x256xf32>
    %1 = vector.shape_cast %0 : vector<1x64x256xf32> to vector<64x256xf32>
    %c0_2 = arith.constant 0 : index
    %c0_3 = arith.constant 0 : index
    %c0_4 = arith.constant 0 : index
    %2 = vector.load %arg3[%c0_2, %c0_3, %c0_4] : memref<1x256x8xf32, #tpu.memory_space<vmem>>, vector<1x256x8xf32>
    %3 = vector.shape_cast %2 : vector<1x256x8xf32> to vector<256x8xf32>
    %c0_5 = arith.constant 0 : index
    %c0_6 = arith.constant 0 : index
    %c0_7 = arith.constant 0 : index
    %4 = vector.load %arg4[%c0_5, %c0_6, %c0_7] : memref<1x8x256xbf16, #tpu.memory_space<vmem>>, vector<1x8x256xbf16>
    %5 = vector.shape_cast %4 : vector<1x8x256xbf16> to vector<8x256xbf16>
    %c0_8 = arith.constant 0 : index
    %c0_9 = arith.constant 0 : index
    %c0_10 = arith.constant 0 : index
    %c0_11 = arith.constant 0 : index
    %6 = vector.load %arg5[%c0_8, %c0_9, %c0_10, %c0_11] : memref<1x8x8x32xbf16, #tpu.memory_space<vmem>>, vector<1x8x8x32xbf16>
    %7 = vector.shape_cast %6 : vector<1x8x8x32xbf16> to vector<8x8x32xbf16>
    %cst = arith.constant dense<0.000000e+00> : vector<64x8xf32>
    %8 = tpu.matmul %1, %3, %cst {dimension_numbers = #tpu.dot_dimension_numbers<[1], [0], [0], [1], [0, 0, 1, 1], [], []>} : vector<64x256xf32>, vector<256x8xf32>, vector<64x8xf32> -> vector<64x8xf32>
    %c0_12 = arith.constant 0 : index
    %c0_13 = arith.constant 0 : index
    %9 = vector.load %arg6[%c0_12, %c0_13] : memref<8x32xbf16, #tpu.memory_space<vmem>>, vector<8x32xbf16>
    %10 = vector.shape_cast %9 : vector<8x32xbf16> to vector<1x8x32xbf16>
    %11 = vector.shape_cast %10 : vector<1x8x32xbf16> to vector<1x8x32xbf16>
    %12 = vector.broadcast %11 : vector<1x8x32xbf16> to vector<8x8x32xbf16>
    "tpu.trace_start"() <{level = 10 : i32, message = "ihc,ijc->ihj"}> : () -> ()
    %cst_14 = arith.constant dense<0.000000e+00> : vector<8x8x8xf32>
    %13 = tpu.matmul %12, %7, %cst_14 {dimension_numbers = #tpu.dot_dimension_numbers<[2], [2], [1], [1], [0, 0, 0, 1, 1, 1], [0], [0]>} : vector<8x8x32xbf16>, vector<8x8x32xbf16>, vector<8x8x8xf32> -> vector<8x8x8xf32>
    "tpu.trace_stop"() : () -> ()
    %14 = vector.shape_cast %13 : vector<8x8x8xf32> to vector<64x8xf32>
    %15 = arith.addf %8, %14 : vector<64x8xf32>
    %cst_15 = arith.constant dense<0xFF800000> : vector<64xf32>
    %16 = vector.multi_reduction <maximumf>, %15, %cst_15 [1] : vector<64x8xf32> to vector<64xf32>
    %17 = vector.shape_cast %16 : vector<64xf32> to vector<64x1xf32>
    %18 = vector.broadcast %17 : vector<64x1xf32> to vector<64x8xf32>
    %19 = arith.subf %15, %18 : vector<64x8xf32>
    %20 = math.exp %19 : vector<64x8xf32>
    %cst_16 = arith.constant dense<0.000000e+00> : vector<64xf32>
    %21 = vector.multi_reduction <add>, %20, %cst_16 [1] : vector<64x8xf32> to vector<64xf32>
    %22 = vector.shape_cast %21 : vector<64xf32> to vector<64x1xf32>
    %23 = tpu.reciprocal %22 {approx = true} : vector<64x1xf32> -> vector<64x1xf32>
    %24 = vector.broadcast %23 : vector<64x1xf32> to vector<64x8xf32>
    %25 = arith.mulf %20, %24 : vector<64x8xf32>
    %26 = arith.truncf %25 : vector<64x8xf32> to vector<64x8xbf16>
    %cst_17 = arith.constant dense<0.000000e+00> : vector<64x256xf32>
    %27 = tpu.matmul %26, %5, %cst_17 {dimension_numbers = #tpu.dot_dimension_numbers<[1], [0], [0], [1], [0, 0, 1, 1], [], []>} : vector<64x8xbf16>, vector<8x256xbf16>, vector<64x256xf32> -> vector<64x256xf32>
    %28 = vector.shape_cast %27 : vector<64x256xf32> to vector<8x8x256xf32>
    %c0_18 = arith.constant 0 : index
    %c0_19 = arith.constant 0 : index
    %29 = vector.load %arg7[%c0_18, %c0_19] : memref<8x256xf32, #tpu.memory_space<vmem>>, vector<8x256xf32>
    %30 = vector.shape_cast %29 : vector<8x256xf32> to vector<1x8x256xf32>
    %31 = vector.broadcast %30 : vector<1x8x256xf32> to vector<8x8x256xf32>
    %32 = arith.mulf %28, %31 : vector<8x8x256xf32>
    %cst_20 = arith.constant dense<0.000000e+00> : vector<8x256xf32>
    %33 = vector.multi_reduction <add>, %32, %cst_20 [1] : vector<8x8x256xf32> to vector<8x256xf32>
    %34 = vector.shape_cast %26 : vector<64x8xbf16> to vector<8x8x8xbf16>
    "tpu.trace_start"() <{level = 10 : i32, message = "ihj,ijc->ihc"}> : () -> ()
    %cst_21 = arith.constant dense<0.000000e+00> : vector<8x8x32xf32>
    %35 = tpu.matmul %34, %7, %cst_21 {dimension_numbers = #tpu.dot_dimension_numbers<[2], [1], [1], [2], [0, 0, 0, 1, 1, 2], [0], [0]>} : vector<8x8x8xbf16>, vector<8x8x32xbf16>, vector<8x8x32xf32> -> vector<8x8x32xf32>
    "tpu.trace_stop"() : () -> ()
    %36 = vector.shape_cast %35 : vector<8x8x32xf32> to vector<64x32xf32>
    %c0_22 = arith.constant 0 : index
    %c0_23 = arith.constant 0 : index
    %37 = vector.load %arg9[%c0_22, %c0_23] : memref<32x256xf32, #tpu.memory_space<vmem>>, vector<32x256xf32>
    %cst_24 = arith.constant dense<0.000000e+00> : vector<64x256xf32>
    %38 = tpu.matmul %36, %37, %cst_24 {dimension_numbers = #tpu.dot_dimension_numbers<[1], [0], [0], [1], [0, 0, 1, 1], [], []>} : vector<64x32xf32>, vector<32x256xf32>, vector<64x256xf32> -> vector<64x256xf32>
    %39 = vector.shape_cast %38 : vector<64x256xf32> to vector<8x8x256xf32>
    %c0_25 = arith.constant 0 : index
    %c0_26 = arith.constant 0 : index
    %40 = vector.load %arg8[%c0_25, %c0_26] : memref<8x256xf32, #tpu.memory_space<vmem>>, vector<8x256xf32>
    %41 = vector.shape_cast %40 : vector<8x256xf32> to vector<1x8x256xf32>
    %42 = vector.broadcast %41 : vector<1x8x256xf32> to vector<8x8x256xf32>
    %43 = arith.mulf %39, %42 : vector<8x8x256xf32>
    %cst_27 = arith.constant dense<0.000000e+00> : vector<8x256xf32>
    %44 = vector.multi_reduction <add>, %43, %cst_27 [1] : vector<8x8x256xf32> to vector<8x256xf32>
    %45 = tpu.concatenate %33, %44 in 1 : vector<8x256xf32>, vector<8x256xf32> -> vector<8x512xf32>
    %c0_28 = arith.constant 0 : index
    %c0_29 = arith.constant 0 : index
    %c0_30 = arith.constant 0 : index
    %46 = vector.load %arg10[%c0_28, %c0_29, %c0_30] : memref<1x8x512xf32, #tpu.memory_space<vmem>>, vector<1x8x512xf32>
    %47 = vector.shape_cast %46 : vector<1x8x512xf32> to vector<8x512xf32>
    %48 = vector.shape_cast %45 : vector<8x512xf32> to vector<1x8x512xf32>
    tpu.vector_store %arg10[%c0_28, %c0_29, %c0_30], %48 {strides = array<i32>} : memref<1x8x512xf32, #tpu.memory_space<vmem>>, vector<1x8x512xf32>,
    return
  }
  func.func @transform_0(%arg0: i32, %arg1: i32) -> (i32, i32, i32) {
    %c0_i32 = arith.constant 0 : i32
    %c0_i32_0 = arith.constant 0 : i32
    return %arg0, %arg1, %c0_i32 : i32, i32, i32
  }
  func.func @transform_1(%arg0: i32, %arg1: i32) -> (i32, i32, i32) {
    %c0_i32 = arith.constant 0 : i32
    %c0_i32_0 = arith.constant 0 : i32
    %c0_i32_1 = arith.constant 0 : i32
    return %arg0, %c0_i32, %c0_i32_0 : i32, i32, i32
  }
  func.func @transform_2(%arg0: i32, %arg1: i32) -> (i32, i32, i32) {
    %c0_i32 = arith.constant 0 : i32
    %c0_i32_0 = arith.constant 0 : i32
    %c0_i32_1 = arith.constant 0 : i32
    return %arg0, %c0_i32, %c0_i32_0 : i32, i32, i32
  }
  func.func @transform_3(%arg0: i32, %arg1: i32) -> (i32, i32, i32, i32) {
    %c0_i32 = arith.constant 0 : i32
    %c0_i32_0 = arith.constant 0 : i32
    %c0_i32_1 = arith.constant 0 : i32
    return %arg0, %arg1, %c0_i32, %c0_i32_0 : i32, i32, i32, i32
  }
  func.func @transform_4(%arg0: i32, %arg1: i32) -> (i32, i32) {
    %c0_i32 = arith.constant 0 : i32
    %c0_i32_0 = arith.constant 0 : i32
    %c0_i32_1 = arith.constant 0 : i32
    return %c0_i32, %c0_i32_0 : i32, i32
  }
  func.func @transform_5(%arg0: i32, %arg1: i32) -> (i32, i32) {
    %c0_i32 = arith.constant 0 : i32
    %c0_i32_0 = arith.constant 0 : i32
    %c0_i32_1 = arith.constant 0 : i32
    return %c0_i32, %c0_i32_0 : i32, i32
  }
  func.func @transform_6(%arg0: i32, %arg1: i32) -> (i32, i32) {
    %c0_i32 = arith.constant 0 : i32
    %c0_i32_0 = arith.constant 0 : i32
    %c0_i32_1 = arith.constant 0 : i32
    return %c0_i32, %c0_i32_0 : i32, i32
  }
  func.func @transform_7(%arg0: i32, %arg1: i32) -> (i32, i32) {
    %c0_i32 = arith.constant 0 : i32
    %c0_i32_0 = arith.constant 0 : i32
    %c0_i32_1 = arith.constant 0 : i32
    return %c0_i32, %c0_i32_0 : i32, i32
  }
  func.func @transform_8(%arg0: i32, %arg1: i32) -> (i32, i32, i32) {
    %c0_i32 = arith.constant 0 : i32
    %c0_i32_0 = arith.constant 0 : i32
    return %arg0, %arg1, %c0_i32 : i32, i32, i32
  }
}

module attributes {stable_mosaic.version = 11 : i64} {
  func.func @_post_chain_kernel(%arg0: i32, %arg1: memref<16x512xf32, #tpu.memory_space<vmem>>, %arg2: memref<16x32xf32, #tpu.memory_space<vmem>>, %arg3: memref<512x32xf32, #tpu.memory_space<vmem>>, %arg4: memref<1x32xf32, #tpu.memory_space<vmem>>, %arg5: memref<1x32xf32, #tpu.memory_space<vmem>>, %arg6: memref<1x32xf32, #tpu.memory_space<vmem>>, %arg7: memref<32x32xf32, #tpu.memory_space<vmem>>, %arg8: memref<1x32xf32, #tpu.memory_space<vmem>>, %arg9: memref<32x32xf32, #tpu.memory_space<vmem>>, %arg10: memref<1x32xf32, #tpu.memory_space<vmem>>, %arg11: memref<32x32xf32, #tpu.memory_space<vmem>>, %arg12: memref<1x32xf32, #tpu.memory_space<vmem>>, %arg13: memref<1x32xf32, #tpu.memory_space<vmem>>, %arg14: memref<1x32xf32, #tpu.memory_space<vmem>>, %arg15: memref<32x6xf32, #tpu.memory_space<vmem>>, %arg16: memref<1x6xf32, #tpu.memory_space<vmem>>, %arg17: memref<16x6xf32, #tpu.memory_space<vmem>>) attributes {dimension_semantics = [#tpu.dimension_semantics<parallel>], iteration_bounds = array<i64: 1>, scalar_prefetch = 0 : i64, scratch_operands = 0 : i64, tpu.core_type = #tpu.core_type<tc>, window_params = [{transform_indices = @transform_0, window_bounds = array<i64: 16, 512>}, {transform_indices = @transform_1, window_bounds = array<i64: 16, 32>}, {pipeline_mode = #tpu.pipeline_mode<synchronous>, transform_indices = @transform_2, window_bounds = array<i64: 512, 32>}, {pipeline_mode = #tpu.pipeline_mode<synchronous>, transform_indices = @transform_3, window_bounds = array<i64: 1, 32>}, {pipeline_mode = #tpu.pipeline_mode<synchronous>, transform_indices = @transform_4, window_bounds = array<i64: 1, 32>}, {pipeline_mode = #tpu.pipeline_mode<synchronous>, transform_indices = @transform_5, window_bounds = array<i64: 1, 32>}, {pipeline_mode = #tpu.pipeline_mode<synchronous>, transform_indices = @transform_6, window_bounds = array<i64: 32, 32>}, {pipeline_mode = #tpu.pipeline_mode<synchronous>, transform_indices = @transform_7, window_bounds = array<i64: 1, 32>}, {pipeline_mode = #tpu.pipeline_mode<synchronous>, transform_indices = @transform_8, window_bounds = array<i64: 32, 32>}, {pipeline_mode = #tpu.pipeline_mode<synchronous>, transform_indices = @transform_9, window_bounds = array<i64: 1, 32>}, {pipeline_mode = #tpu.pipeline_mode<synchronous>, transform_indices = @transform_10, window_bounds = array<i64: 32, 32>}, {pipeline_mode = #tpu.pipeline_mode<synchronous>, transform_indices = @transform_11, window_bounds = array<i64: 1, 32>}, {pipeline_mode = #tpu.pipeline_mode<synchronous>, transform_indices = @transform_12, window_bounds = array<i64: 1, 32>}, {pipeline_mode = #tpu.pipeline_mode<synchronous>, transform_indices = @transform_13, window_bounds = array<i64: 1, 32>}, {pipeline_mode = #tpu.pipeline_mode<synchronous>, transform_indices = @transform_14, window_bounds = array<i64: 32, 6>}, {pipeline_mode = #tpu.pipeline_mode<synchronous>, transform_indices = @transform_15, window_bounds = array<i64: 1, 6>}, {transform_indices = @transform_16, window_bounds = array<i64: 16, 6>}]} {
    %c0 = arith.constant 0 : index
    %c0_0 = arith.constant 0 : index
    %0 = vector.load %arg2[%c0, %c0_0] : memref<16x32xf32, #tpu.memory_space<vmem>>, vector<16x32xf32>
    %c0_1 = arith.constant 0 : index
    %c0_2 = arith.constant 0 : index
    %1 = vector.load %arg1[%c0_1, %c0_2] : memref<16x512xf32, #tpu.memory_space<vmem>>, vector<16x512xf32>
    %c0_3 = arith.constant 0 : index
    %c0_4 = arith.constant 0 : index
    %2 = vector.load %arg3[%c0_3, %c0_4] : memref<512x32xf32, #tpu.memory_space<vmem>>, vector<512x32xf32>
    %cst = arith.constant dense<0.000000e+00> : vector<16x32xf32>
    %3 = tpu.matmul %1, %2, %cst {dimension_numbers = #tpu.dot_dimension_numbers<[1], [0], [0], [1], [0, 0, 1, 1], [], []>} : vector<16x512xf32>, vector<512x32xf32>, vector<16x32xf32> -> vector<16x32xf32>
    %c0_5 = arith.constant 0 : index
    %c0_6 = arith.constant 0 : index
    %4 = vector.load %arg4[%c0_5, %c0_6] : memref<1x32xf32, #tpu.memory_space<vmem>>, vector<1x32xf32>
    %5 = vector.broadcast %4 : vector<1x32xf32> to vector<16x32xf32>
    %6 = arith.addf %3, %5 : vector<16x32xf32>
    %7 = arith.addf %6, %0 : vector<16x32xf32>
    %c0_7 = arith.constant 0 : index
    %c0_8 = arith.constant 0 : index
    %8 = vector.load %arg5[%c0_7, %c0_8] : memref<1x32xf32, #tpu.memory_space<vmem>>, vector<1x32xf32>
    %c0_9 = arith.constant 0 : index
    %c0_10 = arith.constant 0 : index
    %9 = vector.load %arg6[%c0_9, %c0_10] : memref<1x32xf32, #tpu.memory_space<vmem>>, vector<1x32xf32>
    %cst_11 = arith.constant dense<0.000000e+00> : vector<16xf32>
    %10 = vector.multi_reduction <add>, %7, %cst_11 [1] : vector<16x32xf32> to vector<16xf32>
    %11 = vector.shape_cast %10 : vector<16xf32> to vector<16x1xf32>
    %cst_12 = arith.constant 3.200000e+01 : f32
    %12 = vector.broadcast %cst_12 : f32 to vector<16x1xf32>
    %13 = arith.divf %11, %12 : vector<16x1xf32>
    %14 = vector.broadcast %13 : vector<16x1xf32> to vector<16x32xf32>
    %15 = arith.subf %7, %14 : vector<16x32xf32>
    %16 = arith.mulf %15, %15 : vector<16x32xf32>
    %cst_13 = arith.constant dense<0.000000e+00> : vector<16xf32>
    %17 = vector.multi_reduction <add>, %16, %cst_13 [1] : vector<16x32xf32> to vector<16xf32>
    %18 = vector.shape_cast %17 : vector<16xf32> to vector<16x1xf32>
    %cst_14 = arith.constant 3.200000e+01 : f32
    %19 = vector.broadcast %cst_14 : f32 to vector<16x1xf32>
    %20 = arith.divf %18, %19 : vector<16x1xf32>
    %21 = vector.broadcast %13 : vector<16x1xf32> to vector<16x32xf32>
    %22 = arith.subf %7, %21 : vector<16x32xf32>
    %cst_15 = arith.constant 9.99999974E-6 : f32
    %23 = vector.broadcast %cst_15 : f32 to vector<16x1xf32>
    %24 = arith.addf %20, %23 : vector<16x1xf32>
    %25 = math.rsqrt %24 : vector<16x1xf32>
    %26 = vector.broadcast %25 : vector<16x1xf32> to vector<16x32xf32>
    %27 = arith.mulf %22, %26 : vector<16x32xf32>
    %28 = vector.broadcast %8 : vector<1x32xf32> to vector<16x32xf32>
    %29 = arith.mulf %27, %28 : vector<16x32xf32>
    %30 = vector.broadcast %9 : vector<1x32xf32> to vector<16x32xf32>
    %31 = arith.addf %29, %30 : vector<16x32xf32>
    %c0_16 = arith.constant 0 : index
    %c0_17 = arith.constant 0 : index
    %32 = vector.load %arg7[%c0_16, %c0_17] : memref<32x32xf32, #tpu.memory_space<vmem>>, vector<32x32xf32>
    %cst_18 = arith.constant dense<0.000000e+00> : vector<16x32xf32>
    %33 = tpu.matmul %31, %32, %cst_18 {dimension_numbers = #tpu.dot_dimension_numbers<[1], [0], [0], [1], [0, 0, 1, 1], [], []>} : vector<16x32xf32>, vector<32x32xf32>, vector<16x32xf32> -> vector<16x32xf32>
    %c0_19 = arith.constant 0 : index
    %c0_20 = arith.constant 0 : index
    %34 = vector.load %arg8[%c0_19, %c0_20] : memref<1x32xf32, #tpu.memory_space<vmem>>, vector<1x32xf32>
    %35 = vector.broadcast %34 : vector<1x32xf32> to vector<16x32xf32>
    %36 = arith.addf %33, %35 : vector<16x32xf32>
    %cst_21 = arith.constant 0.000000e+00 : f32
    %37 = vector.broadcast %cst_21 : f32 to vector<16x32xf32>
    %38 = arith.maximumf %36, %37 : vector<16x32xf32>
    %c0_22 = arith.constant 0 : index
    %c0_23 = arith.constant 0 : index
    %39 = vector.load %arg9[%c0_22, %c0_23] : memref<32x32xf32, #tpu.memory_space<vmem>>, vector<32x32xf32>
    %cst_24 = arith.constant dense<0.000000e+00> : vector<16x32xf32>
    %40 = tpu.matmul %38, %39, %cst_24 {dimension_numbers = #tpu.dot_dimension_numbers<[1], [0], [0], [1], [0, 0, 1, 1], [], []>} : vector<16x32xf32>, vector<32x32xf32>, vector<16x32xf32> -> vector<16x32xf32>
    %c0_25 = arith.constant 0 : index
    %c0_26 = arith.constant 0 : index
    %41 = vector.load %arg10[%c0_25, %c0_26] : memref<1x32xf32, #tpu.memory_space<vmem>>, vector<1x32xf32>
    %42 = vector.broadcast %41 : vector<1x32xf32> to vector<16x32xf32>
    %43 = arith.addf %40, %42 : vector<16x32xf32>
    %cst_27 = arith.constant 0.000000e+00 : f32
    %44 = vector.broadcast %cst_27 : f32 to vector<16x32xf32>
    %45 = arith.maximumf %43, %44 : vector<16x32xf32>
    %c0_28 = arith.constant 0 : index
    %c0_29 = arith.constant 0 : index
    %46 = vector.load %arg11[%c0_28, %c0_29] : memref<32x32xf32, #tpu.memory_space<vmem>>, vector<32x32xf32>
    %cst_30 = arith.constant dense<0.000000e+00> : vector<16x32xf32>
    %47 = tpu.matmul %45, %46, %cst_30 {dimension_numbers = #tpu.dot_dimension_numbers<[1], [0], [0], [1], [0, 0, 1, 1], [], []>} : vector<16x32xf32>, vector<32x32xf32>, vector<16x32xf32> -> vector<16x32xf32>
    %c0_31 = arith.constant 0 : index
    %c0_32 = arith.constant 0 : index
    %48 = vector.load %arg12[%c0_31, %c0_32] : memref<1x32xf32, #tpu.memory_space<vmem>>, vector<1x32xf32>
    %49 = vector.broadcast %48 : vector<1x32xf32> to vector<16x32xf32>
    %50 = arith.addf %47, %49 : vector<16x32xf32>
    %51 = arith.addf %50, %31 : vector<16x32xf32>
    %c0_33 = arith.constant 0 : index
    %c0_34 = arith.constant 0 : index
    %52 = vector.load %arg13[%c0_33, %c0_34] : memref<1x32xf32, #tpu.memory_space<vmem>>, vector<1x32xf32>
    %c0_35 = arith.constant 0 : index
    %c0_36 = arith.constant 0 : index
    %53 = vector.load %arg14[%c0_35, %c0_36] : memref<1x32xf32, #tpu.memory_space<vmem>>, vector<1x32xf32>
    %cst_37 = arith.constant dense<0.000000e+00> : vector<16xf32>
    %54 = vector.multi_reduction <add>, %51, %cst_37 [1] : vector<16x32xf32> to vector<16xf32>
    %55 = vector.shape_cast %54 : vector<16xf32> to vector<16x1xf32>
    %cst_38 = arith.constant 3.200000e+01 : f32
    %56 = vector.broadcast %cst_38 : f32 to vector<16x1xf32>
    %57 = arith.divf %55, %56 : vector<16x1xf32>
    %58 = vector.broadcast %57 : vector<16x1xf32> to vector<16x32xf32>
    %59 = arith.subf %51, %58 : vector<16x32xf32>
    %60 = arith.mulf %59, %59 : vector<16x32xf32>
    %cst_39 = arith.constant dense<0.000000e+00> : vector<16xf32>
    %61 = vector.multi_reduction <add>, %60, %cst_39 [1] : vector<16x32xf32> to vector<16xf32>
    %62 = vector.shape_cast %61 : vector<16xf32> to vector<16x1xf32>
    %cst_40 = arith.constant 3.200000e+01 : f32
    %63 = vector.broadcast %cst_40 : f32 to vector<16x1xf32>
    %64 = arith.divf %62, %63 : vector<16x1xf32>
    %65 = vector.broadcast %57 : vector<16x1xf32> to vector<16x32xf32>
    %66 = arith.subf %51, %65 : vector<16x32xf32>
    %cst_41 = arith.constant 9.99999974E-6 : f32
    %67 = vector.broadcast %cst_41 : f32 to vector<16x1xf32>
    %68 = arith.addf %64, %67 : vector<16x1xf32>
    %69 = math.rsqrt %68 : vector<16x1xf32>
    %70 = vector.broadcast %69 : vector<16x1xf32> to vector<16x32xf32>
    %71 = arith.mulf %66, %70 : vector<16x32xf32>
    %72 = vector.broadcast %52 : vector<1x32xf32> to vector<16x32xf32>
    %73 = arith.mulf %71, %72 : vector<16x32xf32>
    %74 = vector.broadcast %53 : vector<1x32xf32> to vector<16x32xf32>
    %75 = arith.addf %73, %74 : vector<16x32xf32>
    %c0_42 = arith.constant 0 : index
    %c0_43 = arith.constant 0 : index
    %76 = vector.load %arg15[%c0_42, %c0_43] : memref<32x6xf32, #tpu.memory_space<vmem>>, vector<32x6xf32>
    %cst_44 = arith.constant dense<0.000000e+00> : vector<16x6xf32>
    %77 = tpu.matmul %75, %76, %cst_44 {dimension_numbers = #tpu.dot_dimension_numbers<[1], [0], [0], [1], [0, 0, 1, 1], [], []>} : vector<16x32xf32>, vector<32x6xf32>, vector<16x6xf32> -> vector<16x6xf32>
    %c0_45 = arith.constant 0 : index
    %c0_46 = arith.constant 0 : index
    %78 = vector.load %arg16[%c0_45, %c0_46] : memref<1x6xf32, #tpu.memory_space<vmem>>, vector<1x6xf32>
    %79 = vector.broadcast %78 : vector<1x6xf32> to vector<16x6xf32>
    %80 = arith.addf %77, %79 : vector<16x6xf32>
    %c0_47 = arith.constant 0 : index
    %c0_48 = arith.constant 0 : index
    %81 = vector.load %arg17[%c0_47, %c0_48] : memref<16x6xf32, #tpu.memory_space<vmem>>, vector<16x6xf32>
    tpu.vector_store %arg17[%c0_47, %c0_48], %80 {strides = array<i32>} : memref<16x6xf32, #tpu.memory_space<vmem>>, vector<16x6xf32>,
    return
  }
  func.func @transform_0(%arg0: i32) -> (i32, i32) {
    %c0_i32 = arith.constant 0 : i32
    %c0_i32_0 = arith.constant 0 : i32
    return %arg0, %c0_i32 : i32, i32
  }
  func.func @transform_1(%arg0: i32) -> (i32, i32) {
    %c0_i32 = arith.constant 0 : i32
    %c0_i32_0 = arith.constant 0 : i32
    return %arg0, %c0_i32 : i32, i32
  }
  func.func @transform_2(%arg0: i32) -> (i32, i32) {
    %c0_i32 = arith.constant 0 : i32
    %c0_i32_0 = arith.constant 0 : i32
    %c0_i32_1 = arith.constant 0 : i32
    return %c0_i32, %c0_i32_0 : i32, i32
  }
  func.func @transform_3(%arg0: i32) -> (i32, i32) {
    %c0_i32 = arith.constant 0 : i32
    %c0_i32_0 = arith.constant 0 : i32
    %c0_i32_1 = arith.constant 0 : i32
    return %c0_i32, %c0_i32_0 : i32, i32
  }
  func.func @transform_4(%arg0: i32) -> (i32, i32) {
    %c0_i32 = arith.constant 0 : i32
    %c0_i32_0 = arith.constant 0 : i32
    %c0_i32_1 = arith.constant 0 : i32
    return %c0_i32, %c0_i32_0 : i32, i32
  }
  func.func @transform_5(%arg0: i32) -> (i32, i32) {
    %c0_i32 = arith.constant 0 : i32
    %c0_i32_0 = arith.constant 0 : i32
    %c0_i32_1 = arith.constant 0 : i32
    return %c0_i32, %c0_i32_0 : i32, i32
  }
  func.func @transform_6(%arg0: i32) -> (i32, i32) {
    %c0_i32 = arith.constant 0 : i32
    %c0_i32_0 = arith.constant 0 : i32
    %c0_i32_1 = arith.constant 0 : i32
    return %c0_i32, %c0_i32_0 : i32, i32
  }
  func.func @transform_7(%arg0: i32) -> (i32, i32) {
    %c0_i32 = arith.constant 0 : i32
    %c0_i32_0 = arith.constant 0 : i32
    %c0_i32_1 = arith.constant 0 : i32
    return %c0_i32, %c0_i32_0 : i32, i32
  }
  func.func @transform_8(%arg0: i32) -> (i32, i32) {
    %c0_i32 = arith.constant 0 : i32
    %c0_i32_0 = arith.constant 0 : i32
    %c0_i32_1 = arith.constant 0 : i32
    return %c0_i32, %c0_i32_0 : i32, i32
  }
  func.func @transform_9(%arg0: i32) -> (i32, i32) {
    %c0_i32 = arith.constant 0 : i32
    %c0_i32_0 = arith.constant 0 : i32
    %c0_i32_1 = arith.constant 0 : i32
    return %c0_i32, %c0_i32_0 : i32, i32
  }
  func.func @transform_10(%arg0: i32) -> (i32, i32) {
    %c0_i32 = arith.constant 0 : i32
    %c0_i32_0 = arith.constant 0 : i32
    %c0_i32_1 = arith.constant 0 : i32
    return %c0_i32, %c0_i32_0 : i32, i32
  }
  func.func @transform_11(%arg0: i32) -> (i32, i32) {
    %c0_i32 = arith.constant 0 : i32
    %c0_i32_0 = arith.constant 0 : i32
    %c0_i32_1 = arith.constant 0 : i32
    return %c0_i32, %c0_i32_0 : i32, i32
  }
  func.func @transform_12(%arg0: i32) -> (i32, i32) {
    %c0_i32 = arith.constant 0 : i32
    %c0_i32_0 = arith.constant 0 : i32
    %c0_i32_1 = arith.constant 0 : i32
    return %c0_i32, %c0_i32_0 : i32, i32
  }
  func.func @transform_13(%arg0: i32) -> (i32, i32) {
    %c0_i32 = arith.constant 0 : i32
    %c0_i32_0 = arith.constant 0 : i32
    %c0_i32_1 = arith.constant 0 : i32
    return %c0_i32, %c0_i32_0 : i32, i32
  }
  func.func @transform_14(%arg0: i32) -> (i32, i32) {
    %c0_i32 = arith.constant 0 : i32
    %c0_i32_0 = arith.constant 0 : i32
    %c0_i32_1 = arith.constant 0 : i32
    return %c0_i32, %c0_i32_0 : i32, i32
  }
  func.func @transform_15(%arg0: i32) -> (i32, i32) {
    %c0_i32 = arith.constant 0 : i32
    %c0_i32_0 = arith.constant 0 : i32
    %c0_i32_1 = arith.constant 0 : i32
    return %c0_i32, %c0_i32_0 : i32, i32
  }
  func.func @transform_16(%arg0: i32) -> (i32, i32) {
    %c0_i32 = arith.constant 0 : i32
    %c0_i32_0 = arith.constant 0 : i32
    return %arg0, %c0_i32 : i32, i32
  }
}

</mosaic_0001>

<bundles_post_ra>
// kernel: structure_module.3
= control target key start
LH: loop header
LB: loop body
LE: loop exit
PB: predicated region body
PF: predicated region fallthrough
CT: control target
= control target key end

     0   :  { %v361_v3 = vmov 0.0   ;;  %vm72_vm0 = vcmask 261120   ;;  %v42_v39 = vlaneseq  ;;  %s507_s1 = inlined_call_operand.vmem [shape: f32[32,672], index: 1, kind: input, shape index: {}]   ;;  %s508_s0 = inlined_call_operand.vmem [shape: f32[16,32], index: 0, kind: input, shape index: {}]   ;;  %s509_s2 = inlined_call_operand.vmem [shape: f32[1,672], index: 2, kind: input, shape index: {}]   ;;  %s510_s3 = inlined_call_operand.vmem [shape: f32[16,672], index: 3, kind: output, shape index: {}]  }
   0x1   :  { %v17_v0 = vld [vmem:[%s507_s1 + $0x8] sm:$0xff]  ;;  %v23_v1 = vld [vmem:[%s507_s1 + $0x38] sm:$0xff]  ;;  %143 = vmatprep.mubr.f32.mxu0 %v361_v3  ;;  %220 = vmatprep.mubr.f32.mxu1 %v361_v3  ;;  %v16_v6 = vld [vmem:[%s507_s1] sm:$0xff] }
   0x2   :  { %v19_v2 = vld [vmem:[%s507_s1 + $0x18] sm:$0xff]  ;;  %v332_v4 = vpack.c.bf16 %v23_v1, %v17_v0  ;;  %v25_v5 = vld [vmem:[%s507_s1 + $0x48] sm:$0xff]  ;;  %v22_v7 = vld [vmem:[%s507_s1 + $0x30] sm:$0xff]  ;;  %v43_v40 = vshrl.u32 %v42_v39, 7 }
   0x3   :  { %v340_v8 = vpack.c.bf16 %v25_v5, %v19_v2  ;;  %v334_v9 = vpack.c.bf16 %v22_v7, %v16_v6  ;;  %v18_v10 = vld [vmem:[%s507_s1 + $0x10] sm:$0xff]  ;;  %v24_v11 = vld [vmem:[%s507_s1 + $0x40] sm:$0xff]  ;;  %v29_v12 = vld [vmem:[%s507_s1 + $0x68] sm:$0xff] }
   0x4   :  { %333 = vmatprep.subr.bf16.mxu0 %v332_v4  ;;  %v342_v13 = vpack.c.bf16 %v24_v11, %v18_v10  ;;  %v35_v14 = vld [vmem:[%s507_s1 + $0x98] sm:$0xff]  ;;  %v37_v16 = vld [vmem:[%s507_s1 + $0xa8] sm:$0xff]  ;;  %v28_v19 = vld [vmem:[%s507_s1 + $0x60] sm:$0xff]  ;;  %v44_v41 = vsub.s32 0, %v43_v40  ;;  %v52_v43 = vsub.s32 2, %v43_v40  ;;  %v48_v44 = vsub.s32 1, %v43_v40 }
   0x5   :  { %v31_v15 = vld [vmem:[%s507_s1 + $0x78] sm:$0xff]  ;;  %341 = vmatprep.subr.bf16.mxu1 %v340_v8  ;;  %335 = vmatpush1.bf16.msra.mxu0 %v334_v9  ;;  %v336_v17 = vpack.c.bf16 %v35_v14, %v29_v12  ;;  %v34_v20 = vld [vmem:[%s507_s1 + $0x90] sm:$0xff]  ;;  %v36_v23 = vld [vmem:[%s507_s1 + $0xa0] sm:$0xff]  ;;  %v56_v45 = vsub.s32 3, %v43_v40  ;;  %v60_v54 = vsub.s32 4, %v43_v40  ;;  %v64_v58 = vsub.s32 5, %v43_v40 }
   0x6   :  { %v344_v18 = vpack.c.bf16 %v37_v16, %v31_v15  ;;  %v30_v21 = vld [vmem:[%s507_s1 + $0x70] sm:$0xff]  ;;  %343 = vmatpush1.bf16.msra.mxu1 %v342_v13  ;;  %v338_v22 = vpack.c.bf16 %v34_v20, %v28_v19  ;;  %v21_v24 = vld [vmem:[%s507_s1 + $0x28] sm:$0xff]  ;;  %v27_v26 = vld [vmem:[%s507_s1 + $0x58] sm:$0xff] }
   0x7   :  { %337 = vmatprep.subr.bf16.mxu0 %v336_v17  ;;  %v346_v25 = vpack.c.bf16 %v36_v23, %v30_v21  ;;  %v20_v27 = vld [vmem:[%s507_s1 + $0x20] sm:$0xff]  ;;  %v26_v28 = vld [vmem:[%s507_s1 + $0x50] sm:$0xff]  ;;  %v348_v29 = vpack.c.bf16 %v27_v26, %v21_v24  ;;  %v33_v30 = vld [vmem:[%s507_s1 + $0x88] sm:$0xff] }
   0x8   :  { %345 = vmatprep.subr.bf16.mxu1 %v344_v18  ;;  %v39_v31 = vld [vmem:[%s507_s1 + $0xb8] sm:$0xff]  ;;  %v14_v32 = vld [vmem:[%s508_s0] sm:$0xff]  ;;  %v350_v33 = vpack.c.bf16 %v26_v28, %v20_v27  ;;  %v38_v35 = vld [vmem:[%s507_s1 + $0xb0] sm:$0xff] }
   0x9   :  { %339 = vmatpush1.bf16.msra.mxu0 %v338_v22  ;;  %v32_v34 = vld [vmem:[%s507_s1 + $0x80] sm:$0xff]  ;;  %v352_v36 = vpack.c.bf16 %v39_v31, %v33_v30  ;;  %v15_v37 = vld [vmem:[%s508_s0 + $0x8] sm:$0xff] }
   0xa   :  { %347 = vmatpush1.bf16.msra.mxu1 %v346_v25  ;;  %349 = vmatprep.subr.bf16.mxu0 %v348_v29  ;;  %v354_v38 = vpack.c.bf16 %v38_v35, %v32_v34  ;;  %v40_v42 = vld [vmem:[%s509_s2] sm:$0x3f] }
   0xb   :  { %356 = vmatprep.subr.bf16.mxu1 %v348_v29  ;;  %v45_v46 = vrot.slane %v40_v42, %v44_v41  ;;  %v53_v47 = vrot.slane %v40_v42, %v52_v43  ;;  %v49_v48 = vrot.slane %v40_v42, %v48_v44  ;;  %v57_v49 = vrot.slane %v40_v42, %v56_v45 }
   0xc   :  { %326 = vmatmul.mubr.msk.f32.vlgmr.msra.gmra.mrb[0].mxu0 %vm72_vm0, %v14_v32  ;;  %v61_v0 = vrot.slane %v40_v42, %v60_v54  ;;  %v65_v4 = vrot.slane %v40_v42, %v64_v58 }
   0xd   :  { %328 = vmatmul.mubr.msk.f32.vlgmr.msra.gmra.mrb[0].mxu1 %vm72_vm0, %v14_v32  ;;  %351 = vmatpush1.bf16.msra.mxu0 %v350_v33 }
   0xe   :  { %358 = vmatpush1.bf16.msra.mxu1 %v350_v33  ;;  %149 = vmatprep.mubr.f32.mxu0 %v361_v3 }
   0xf   :  { %226 = vmatprep.mubr.f32.mxu1 %v361_v3  ;;  %353 = vmatprep.subr.bf16.mxu0 %v352_v36 }
  0x10   :  { %327 = vmatmul.mubr.msk.f32.gmra.mrb[2].mxu0 %vm72_vm0, %v15_v37  ;;  %357 = vmatprep.subr.bf16.mxu1 %v352_v36 }
  0x11   :  { %329 = vmatmul.mubr.msk.f32.gmra.mrb[2].mxu1 %vm72_vm0, %v15_v37  ;;  %355 = vmatpush1.bf16.msra.mxu0 %v354_v38 }
  0x12   :  { %359 = vmatpush1.bf16.msra.mxu1 %v354_v38  ;;  %297 = vmatprep.mubr.f32.mxu0 %v361_v3 }
  0x13   :  { %303 = vmatprep.mubr.f32.mxu1 %v361_v3 }
  0x14   :  { %330 = vmatmul.mubr.msk.f32.vlgmr.msra.gmra.mrb[4].mxu0 %vm72_vm0, %v14_v32 }
  0x15   :  { %331 = vmatmul.mubr.msk.f32.vlgmr.msra.gmra.mrb[4].mxu1 %vm72_vm0, %v15_v37 }
  0xdf   :  { %v145_v50 = vpop.f32.mrb[0].mxu0 }
  0xe0   :  { %v146_v51 = vadd.f32 %v145_v50, %v45_v46  ;;  %v222_v52 = vpop.f32.mrb[0].mxu1  ;;  %v147_v53 = vpop.f32.mrb[1].mxu0 }
  0xe1   :  { %v223_v55 = vadd.f32 %v222_v52, %v53_v47  ;;  %v148_v56 = vadd.f32 %v147_v53, %v49_v48  ;;  %v224_v57 = vpop.f32.mrb[1].mxu1 }
  0xe2   :  { %310 = vst [vmem:[%s510_s3] sm:$0xff] %v146_v51  ;;  %v225_v59 = vadd.f32 %v224_v57, %v57_v49 }
  0xe3   :  { %312 = vst [vmem:[%s510_s3 + $0x10] sm:$0xff] %v223_v55  ;;  %311 = vst [vmem:[%s510_s3 + $0x8] sm:$0xff] %v148_v56  ;;  %v151_v60 = vpop.f32.mrb[2].mxu0 }
  0xe4   :  { %313 = vst [vmem:[%s510_s3 + $0x18] sm:$0xff] %v225_v59  ;;  %v152_v61 = vadd.f32 %v151_v60, %v45_v46  ;;  %v228_v62 = vpop.f32.mrb[2].mxu1  ;;  %v153_v63 = vpop.f32.mrb[3].mxu0 }
  0xe5   :  { %v229_v1 = vadd.f32 %v228_v62, %v53_v47  ;;  %v154_v2 = vadd.f32 %v153_v63, %v49_v48  ;;  %v230_v3 = vpop.f32.mrb[3].mxu1 }
  0xe6   :  { %316 = vst [vmem:[%s510_s3 + $0x30] sm:$0xff] %v152_v61  ;;  %v231_v5 = vadd.f32 %v230_v3, %v57_v49 }
  0xe7   :  { %318 = vst [vmem:[%s510_s3 + $0x40] sm:$0xff] %v229_v1  ;;  %317 = vst [vmem:[%s510_s3 + $0x38] sm:$0xff] %v154_v2  ;;  %v299_v6 = vpop.f32.mrb[4].mxu0 }
  0xe8   :  { %319 = vst [vmem:[%s510_s3 + $0x48] sm:$0xff] %v231_v5  ;;  %v300_v7 = vadd.f32 %v299_v6, %v61_v0  ;;  %v305_v8 = vpop.f32.mrb[4].mxu1  ;;  %v301_v9 = vpop.f32.mrb[5].mxu0 }
  0xe9   :  { %v306_v10 = vadd.f32 %v305_v8, %v61_v0  ;;  %v302_v11 = vadd.f32 %v301_v9, %v65_v4  ;;  %v307_v12 = vpop.f32.mrb[5].mxu1 }
  0xea   :  { %314 = vst [vmem:[%s510_s3 + $0x20] sm:$0xff] %v300_v7  ;;  %v308_v13 = vadd.f32 %v307_v12, %v65_v4 }
  0xeb   :  { %320 = vst [vmem:[%s510_s3 + $0x50] sm:$0xff] %v306_v10  ;;  %315 = vst.msk [vmem:[%s510_s3 + $0x28] sm:$0xff] %vm72_vm0, %v302_v11 }
  0xec   :  { %321 = vst.msk [vmem:[%s510_s3 + $0x58] sm:$0xff] %vm72_vm0, %v308_v13 }

// kernel: structure_module.4
= control target key start
LH: loop header
LB: loop body
LE: loop exit
PB: predicated region body
PF: predicated region fallthrough
CT: control target
= control target key end

     0   :  { %s2517_s27 = smov 0   ;;  %s2519_s28 = smov 0   ;;  %s2934_s0 = inlined_call_operand.vmem [shape: f32[2,64,256], index: 0, kind: input, shape index: {}]   ;;  %s2935_s1 = inlined_call_operand.vmem [shape: f32[2,256,8], index: 1, kind: input, shape index: {}]   ;;  %s2936_s2 = inlined_call_operand.vmem [shape: bf16[2,8,256], index: 2, kind: input, shape index: {}]   ;;  %s2937_s3 = inlined_call_operand.vmem [shape: bf16[2,8,8,32], index: 3, kind: input, shape index: {}]   ;;  %s2938_s4 = inlined_call_operand.vmem [shape: bf16[8,32], index: 4, kind: input, shape index: {}]   ;;  %s2939_s5 = inlined_call_operand.vmem [shape: f32[8,256], index: 5, kind: input, shape index: {}, may-alias: {5,6}]   ;;  %s2940_s6 = inlined_call_operand.vmem [shape: f32[8,256], index: 6, kind: input, shape index: {}, may-alias: {5,6}]   ;;  %s2941_s7 = inlined_call_operand.vmem [shape: f32[32,256], index: 7, kind: input, shape index: {}]   ;;  %s2942_s8 = inlined_call_operand.vmem [shape: f32[2,8,512], index: 8, kind: output, shape index: {}]  }
   0x1   :  { %s2521_s29 = smov 0  }
   0x2 LB: > { %s30_s30 = sadd.s32 1, %s2463_s28  ;;  %p2091_p0 = scmp.ge.s32.totalorder %s2467_s29, 1  ;;  %s2467_s29 = sphi %s2521_s29, %s18_s29   ;;  %s2463_s28 = sphi %s2519_s28, %s2944_s28   ;;  %s2459_s27 = sphi %s2517_s27, %s2943_s27  }
   0x3   : > { %p32_p1 = scmp.ge.s32.totalorder %s30_s30, 2  ;;  %p321_p2 = scmp.lt.s32.totalorder %s2467_s29, 3 }
   0x5   : > { %s2946_s30 = smov (%p32_p1, %s30_s30), 0  ;;  %p322_p3 = pnand %p2091_p0, %p321_p2 }
   0x6   : > { %p384_p4 = scmp.lt.s32.totalorder (!%p322_p3), %s2459_s27, 1  ;;  %v2469_v0 = vmov (!%p322_p3), 0.0   ;;  %vm2470_vm0 = vmmov (!%p322_p3), 0   ;;  %vm482_vm1 = vcmask (!%p322_p3), 261120   ;;  %v2563_v4 = vld [vmem:[%s2938_s4] sm:$0xf] (!%p322_p3) }
   0x7   : > { %325 = sbr.rel (%p322_p3) target bundleno = 1128 (0x468), region = 52  ;;  %2244 = vmatprep.subr.bf16.mxu0 (!%p322_p3), %v2469_v0  ;;  %2246 = vmatprep.mubr.msk.bf16.mxu0 (!%p322_p3), %vm2470_vm0, %v2469_v0  ;;  %vm935_vm2 = vcmask (!%p322_p3), 64512   ;;  %vm1045_vm3 = vcmask (!%p322_p3), 1043456   ;;  %vm1894_vm4 = vcmask (!%p322_p3), 1041409   ;;  %vm1896_vm5 = vcmask (!%p322_p3), 1042434  }
   0x8   : > { %2250 = vmatprep.subr.bf16.mxu1 (!%p322_p3), %v2469_v0  ;;  %2252 = vmatprep.mubr.msk.bf16.mxu1 (!%p322_p3), %vm2470_vm0, %v2469_v0  ;;  %vm1898_vm6 = vcmask (!%p322_p3), 1043459   ;;  %vm1900_vm7 = vcmask (!%p322_p3), 1044484   ;;  %vm1902_vm8 = vcmask (!%p322_p3), 1045509   ;;  %vm1904_vm9 = vcmask (!%p322_p3), 1046534  }
   0x9   : > { %vm1906_vm10 = vcmask (!%p322_p3), 1047559  }
   0xe   : > { %s2948_s27 = smov (!%p384_p4, %s2459_s27), 1 }
   0xf   : > { %s2146_s9 = sshll.u32 %s2948_s27, 5  ;;  %s2144_s15 = sshll.u32 %s2948_s27, 8 }
  0x10   : > { %s2549_s12 = scalar_lea.vmem %s2937_s3, %s2146_s9  ;;  %s2590_s18 = scalar_lea.vmem %s2935_s1, %s2144_s15 }
  0x11   : > { %v2552_v1 = vld [vmem:[%s2549_s12] sm:$0xf]  ;;  %v2558_v3 = vld [vmem:[%s2549_s12 + $0x8] sm:$0xf]  ;;  %v2572_v6 = vld [vmem:[%s2549_s12 + $0x4] sm:$0xf]  ;;  %s2864_s15 = scalar_lea.vmem %s2942_s8, %s2146_s9 }
  0x12   : > { %v487_v2 = vsel %vm482_vm1, %v2552_v1, 0  ;;  %v573_v5 = vsel %vm482_vm1, %v2558_v3, 0  ;;  %v530_v7 = vsel %vm482_vm1, %v2572_v6, 0  ;;  %v2578_v8 = vld [vmem:[%s2549_s12 + $0x10] sm:$0xf]  ;;  %v456_v13 = vld [vmem:[%s2590_s18 + $0x80] sm:$0xff] }
  0x13   : > { %2245 = vmatpush3.bf16.xpose.msra.mxu0 %v487_v2  ;;  %2251 = vmatpush3.bf16.xpose.msra.mxu1 %v530_v7  ;;  %v2583_v9 = vld [vmem:[%s2549_s12 + $0xc] sm:$0xf]  ;;  %v659_v10 = vsel %vm482_vm1, %v2578_v8, 0  ;;  %v2602_v12 = vld [vmem:[%s2549_s12 + $0x18] sm:$0xf]  ;;  %s2143_s19 = sshll.u32 %s2948_s27, 7 }
  0x14   : > { %2256 = vmatprep.subr.bf16.mxu0 %v2469_v0  ;;  %2262 = vmatprep.subr.bf16.mxu1 %v2469_v0  ;;  %v616_v11 = vsel %vm482_vm1, %v2583_v9, 0  ;;  %v457_v14 = vld [vmem:[%s2590_s18 + $0x88] sm:$0xff]  ;;  %v2610_v15 = vld [vmem:[%s2549_s12 + $0x14] sm:$0xf]  ;;  %v745_v16 = vsel %vm482_vm1, %v2602_v12, 0  ;;  %v440_v19 = vld [vmem:[%s2590_s18] sm:$0xff]  ;;  %s2628_s22 = scalar_lea.vmem %s2934_s0, %s2143_s19 }
  0x15   : > { %v2340_v17 = vpack.c.bf16 %v457_v14, %v456_v13  ;;  %v702_v18 = vsel %vm482_vm1, %v2610_v15, 0  ;;  %v441_v20 = vld [vmem:[%s2590_s18 + $0x8] sm:$0xff]  ;;  %v458_v21 = vld [vmem:[%s2590_s18 + $0x90] sm:$0xff]  ;;  %v459_v22 = vld [vmem:[%s2590_s18 + $0x98] sm:$0xff]  ;;  %s2145_s23 = sshll.u32 %s2948_s27, 3 }
  0x16   : > { %v2342_v23 = vpack.c.bf16 %v441_v20, %v440_v19  ;;  %v2636_v24 = vld [vmem:[%s2549_s12 + $0x1c] sm:$0xf]  ;;  %v2344_v25 = vpack.c.bf16 %v459_v22, %v458_v21  ;;  %v442_v26 = vld [vmem:[%s2590_s18 + $0x10] sm:$0xff]  ;;  %v425_v28 = vld [vmem:[%s2628_s22 + $0x8] sm:$0xff]  ;;  %s403_s26 = scalar_lea.vmem %s2936_s2, %s2145_s23 }
  0x17   : > { %v443_v27 = vld [vmem:[%s2590_s18 + $0x18] sm:$0xff]  ;;  %v460_v29 = vld [vmem:[%s2590_s18 + $0xa0] sm:$0xff]  ;;  %v461_v30 = vld [vmem:[%s2590_s18 + $0xa8] sm:$0xff]  ;;  %v788_v31 = vsel %vm482_vm1, %v2636_v24, 0 }
  0x18   : > { %v2346_v32 = vpack.c.bf16 %v443_v27, %v442_v26  ;;  %v2348_v33 = vpack.c.bf16 %v461_v30, %v460_v29  ;;  %v444_v34 = vld [vmem:[%s2590_s18 + $0x20] sm:$0xff]  ;;  %v445_v35 = vld [vmem:[%s2590_s18 + $0x28] sm:$0xff]  ;;  %v462_v36 = vld [vmem:[%s2590_s18 + $0xb0] sm:$0xff] }
  0x19   : > { %v463_v37 = vld [vmem:[%s2590_s18 + $0xb8] sm:$0xff]  ;;  %v2350_v38 = vpack.c.bf16 %v445_v35, %v444_v34  ;;  %v446_v40 = vld [vmem:[%s2590_s18 + $0x30] sm:$0xff]  ;;  %v464_v42 = vld [vmem:[%s2590_s18 + $0xc0] sm:$0xff] }
  0x1a   : > { %2247 = vmatmul.mubr.msk.bf16.vlgmr.msra.gmra.mrb[0].mxu0 %vm482_vm1, %v2563_v4  ;;  %2253 = vmatmul.mubr.msk.bf16.vlgmr.msra.gmra.mrb[0].mxu1 %vm482_vm1, %v2563_v4  ;;  %v2352_v39 = vpack.c.bf16 %v463_v37, %v462_v36  ;;  %v447_v41 = vld [vmem:[%s2590_s18 + $0x38] sm:$0xff]  ;;  %v465_v43 = vld [vmem:[%s2590_s18 + $0xc8] sm:$0xff]  ;;  %v448_v46 = vld [vmem:[%s2590_s18 + $0x40] sm:$0xff] }
  0x1b   : > { %2257 = vmatpush3.bf16.xpose.msra.mxu0 %v573_v5  ;;  %2258 = vmatprep.mubr.msk.bf16.mxu0 %vm2470_vm0, %v2469_v0  ;;  %v2354_v44 = vpack.c.bf16 %v447_v41, %v446_v40  ;;  %v2356_v45 = vpack.c.bf16 %v465_v43, %v464_v42  ;;  %v449_v47 = vld [vmem:[%s2590_s18 + $0x48] sm:$0xff]  ;;  %v466_v48 = vld [vmem:[%s2590_s18 + $0xd0] sm:$0xff]  ;;  %v467_v49 = vld [vmem:[%s2590_s18 + $0xd8] sm:$0xff] }
  0x1c   : > { %2268 = vmatprep.subr.bf16.mxu0 %v2469_v0  ;;  %2263 = vmatpush3.bf16.xpose.msra.mxu1 %v616_v11  ;;  %v2358_v50 = vpack.c.bf16 %v449_v47, %v448_v46  ;;  %v2360_v51 = vpack.c.bf16 %v467_v49, %v466_v48  ;;  %v450_v52 = vld [vmem:[%s2590_s18 + $0x50] sm:$0xff]  ;;  %v451_v53 = vld [vmem:[%s2590_s18 + $0x58] sm:$0xff]  ;;  %v468_v54 = vld [vmem:[%s2590_s18 + $0xe0] sm:$0xff] }
  0x1d   : > { %2264 = vmatprep.mubr.msk.bf16.mxu1 %vm2470_vm0, %v2469_v0  ;;  %2274 = vmatprep.subr.bf16.mxu1 %v2469_v0  ;;  %v469_v55 = vld [vmem:[%s2590_s18 + $0xe8] sm:$0xff]  ;;  %v2362_v56 = vpack.c.bf16 %v451_v53, %v450_v52  ;;  %v452_v58 = vld [vmem:[%s2590_s18 + $0x60] sm:$0xff]  ;;  %v470_v60 = vld [vmem:[%s2590_s18 + $0xf0] sm:$0xff] }
  0x1e   : > { %v2364_v57 = vpack.c.bf16 %v469_v55, %v468_v54  ;;  %v453_v59 = vld [vmem:[%s2590_s18 + $0x68] sm:$0xff]  ;;  %v471_v61 = vld [vmem:[%s2590_s18 + $0xf8] sm:$0xff]  ;;  %v454_v2 = vld [vmem:[%s2590_s18 + $0x70] sm:$0xff] }
  0x1f   : > { %v2366_v62 = vpack.c.bf16 %v453_v59, %v452_v58  ;;  %v2368_v63 = vpack.c.bf16 %v471_v61, %v470_v60  ;;  %v424_v7 = vld [vmem:[%s2628_s22] sm:$0xff]  ;;  %v426_v11 = vld [vmem:[%s2628_s22 + $0x10] sm:$0xff]  ;;  %v429_v13 = vld [vmem:[%s2628_s22 + $0x28] sm:$0xff] }
  0x20   : > { %v428_v14 = vld [vmem:[%s2628_s22 + $0x20] sm:$0xff]  ;;  %v435_v20 = vld [vmem:[%s2628_s22 + $0x58] sm:$0xff]  ;;  %v434_v21 = vld [vmem:[%s2628_s22 + $0x50] sm:$0xff] }
  0x21   : > { %v432_v19 = vld [vmem:[%s2628_s22 + $0x40] sm:$0xff]  ;;  %v437_v22 = vld [vmem:[%s2628_s22 + $0x68] sm:$0xff]  ;;  %v438_v26 = vld [vmem:[%s2628_s22 + $0x70] sm:$0xff] }
  0x22   : > { %2259 = vmatmul.mubr.msk.bf16.vlgmr.msra.gmra.mrb[4].mxu0 %vm482_vm1, %v2563_v4 }
  0x23   : > { %2269 = vmatpush3.bf16.xpose.msra.mxu0 %v659_v10  ;;  %2270 = vmatprep.mubr.msk.bf16.mxu0 %vm2470_vm0, %v2469_v0  ;;  %v427_v10 = vld [vmem:[%s2628_s22 + $0x18] sm:$0xff] }
  0x24   : > { %2280 = vmatprep.subr.bf16.mxu0 %v2469_v0  ;;  %2265 = vmatmul.mubr.msk.bf16.vlgmr.msra.gmra.mrb[4].mxu1 %vm482_vm1, %v2563_v4 }
  0x25   : > { %2275 = vmatpush3.bf16.xpose.msra.mxu1 %v702_v18  ;;  %2276 = vmatprep.mubr.msk.bf16.mxu1 %vm2470_vm0, %v2469_v0  ;;  %v433_v18 = vld [vmem:[%s2628_s22 + $0x48] sm:$0xff] }
  0x26   : > { %2286 = vmatprep.subr.bf16.mxu1 %v2469_v0 }
  0x2a   : > { %2271 = vmatmul.mubr.msk.bf16.vlgmr.msra.gmra.mrb[8].mxu0 %vm482_vm1, %v2563_v4 }
  0x2b   : > { %2281 = vmatpush3.bf16.xpose.msra.mxu0 %v745_v16  ;;  %2282 = vmatprep.mubr.msk.bf16.mxu0 %vm2470_vm0, %v2469_v0  ;;  %v431_v16 = vld [vmem:[%s2628_s22 + $0x38] sm:$0xff] }
  0x2c   : > { %2341 = vmatprep.subr.bf16.mxu0 %v2340_v17  ;;  %2277 = vmatmul.mubr.msk.bf16.vlgmr.msra.gmra.mrb[8].mxu1 %vm482_vm1, %v2563_v4  ;;  %v430_v17 = vld [vmem:[%s2628_s22 + $0x30] sm:$0xff] }
  0x2d   : > { %2287 = vmatpush3.bf16.xpose.msra.mxu1 %v788_v31  ;;  %2288 = vmatprep.mubr.msk.bf16.mxu1 %vm2470_vm0, %v2469_v0 }
  0x32   : > { %2283 = vmatmul.mubr.msk.bf16.vlgmr.msra.gmra.mrb[12].mxu0 %vm482_vm1, %v2563_v4 }
  0x33   : > { %2343 = vmatpush3.bf16.msra.mxu0 %v2342_v23  ;;  %894 = vmatprep.mubr.f32.mxu0 %v425_v28  ;;  %v436_v23 = vld [vmem:[%s2628_s22 + $0x60] sm:$0xff] }
  0x34   : > { %2345 = vmatprep.subr.bf16.mxu0 %v2344_v25  ;;  %2289 = vmatmul.mubr.msk.bf16.vlgmr.msra.gmra.mrb[12].mxu1 %vm482_vm1, %v2563_v4  ;;  %v455_v4 = vld [vmem:[%s2590_s18 + $0x78] sm:$0xff] }
  0x35   : > { %v2370_v5 = vpack.c.bf16 %v455_v4, %v454_v2  ;;  %v439_v25 = vld [vmem:[%s2628_s22 + $0x78] sm:$0xff] }
  0x37   : > { %2347 = vmatpush3.bf16.msra.mxu0 %v2346_v32 }
  0x38   : > { %2349 = vmatprep.subr.bf16.mxu0 %v2348_v33 }
  0x3b   : > { %2351 = vmatpush3.bf16.msra.mxu0 %v2350_v38 }
  0x3c   : > { %2353 = vmatprep.subr.bf16.mxu0 %v2352_v39 }
  0x3f   : > { %2355 = vmatpush3.bf16.msra.mxu0 %v2354_v44 }
  0x40   : > { %2357 = vmatprep.subr.bf16.mxu0 %v2356_v45 }
  0x43   : > { %2359 = vmatpush3.bf16.msra.mxu0 %v2358_v50 }
  0x44   : > { %2361 = vmatprep.subr.bf16.mxu0 %v2360_v51 }
  0x47   : > { %2363 = vmatpush3.bf16.msra.mxu0 %v2362_v56 }
  0x48   : > { %2365 = vmatprep.subr.bf16.mxu0 %v2364_v57 }
  0x4b   : > { %2367 = vmatpush3.bf16.msra.mxu0 %v2366_v62 }
  0x4c   : > { %2369 = vmatprep.subr.bf16.mxu0 %v2368_v63 }
  0x4f   : > { %2371 = vmatpush3.bf16.msra.mxu0 %v2370_v5 }
  0x50   : > { %2310 = vmatprep.subr.bf16.mxu0 %v2469_v0 }
  0x52   : > { %895 = vmatmul.mubr.f32.vlgmr.msra.gmra.mrb[16].mxu0 %v424_v7 }
  0x53   : > { %899 = vmatprep.mubr.f32.mxu0 %v427_v10 }
  0x56   : > { %900 = vmatmul.mubr.f32.gmra.mrb[18].mxu0 %v426_v11 }
  0x57   : > { %904 = vmatprep.mubr.f32.mxu0 %v429_v13 }
  0x5a   : > { %905 = vmatmul.mubr.f32.gmra.mrb[20].mxu0 %v428_v14 }
  0x5b   : > { %909 = vmatprep.mubr.f32.mxu0 %v431_v16 }
  0x5e   : > { %910 = vmatmul.mubr.f32.gmra.mrb[22].mxu0 %v430_v17 }
  0x5f   : > { %914 = vmatprep.mubr.f32.mxu0 %v433_v18 }
  0x62   : > { %915 = vmatmul.mubr.f32.gmra.mrb[24].mxu0 %v432_v19 }
  0x63   : > { %919 = vmatprep.mubr.f32.mxu0 %v435_v20 }
  0x66   : > { %920 = vmatmul.mubr.f32.gmra.mrb[26].mxu0 %v434_v21 }
  0x67   : > { %924 = vmatprep.mubr.f32.mxu0 %v437_v22 }
  0x6a   : > { %925 = vmatmul.mubr.f32.gmra.mrb[28].mxu0 %v436_v23 }
  0x6b   : > { %929 = vmatprep.mubr.f32.mxu0 %v439_v25 }
  0x6e   : > { %930 = vmatmul.mubr.f32.gmra.mrb[30].mxu0 %v438_v26 }
  0x6f   : > { %2312 = vmatprep.mubr.msk.bf16.mxu0 %vm2470_vm0, %v2469_v0 }
  0xed   : > { %v523_v27 = vpop.f32.mrb[0].mxu0  ;;  %v566_v34 = vpop.f32.mrb[0].mxu1 }
  0xee   : > { %v2248_v28 = vpop.f32.mrb[1].mxu0  ;;  %v2254_v36 = vpop.f32.mrb[1].mxu1 }
  0xef   : > { %v526_v29 = vpop.f32.mrb[2].mxu0  ;;  %v569_v37 = vpop.f32.mrb[2].mxu1 }
  0xf0   : > { %v2249_v30 = vpop.f32.mrb[3].mxu0  ;;  %v2255_v38 = vpop.f32.mrb[3].mxu1 }
  0xf5   : > { %v609_v31 = vpop.f32.mrb[4].mxu0 }
  0xf6   : > { %v2260_v32 = vpop.f32.mrb[5].mxu0 }
  0xf7   : > { %v612_v33 = vpop.f32.mrb[6].mxu0  ;;  %v652_v42 = vpop.f32.mrb[4].mxu1 }
  0xf8   : > { %v2261_v35 = vpop.f32.mrb[7].mxu0  ;;  %v2266_v44 = vpop.f32.mrb[5].mxu1 }
  0xf9   : > { %v655_v45 = vpop.f32.mrb[6].mxu1 }
  0xfa   : > { %v2267_v46 = vpop.f32.mrb[7].mxu1 }
  0xfd   : > { %v695_v39 = vpop.f32.mrb[8].mxu0 }
  0xfe   : > { %v2272_v40 = vpop.f32.mrb[9].mxu0 }
  0xff   : > { %v698_v41 = vpop.f32.mrb[10].mxu0  ;;  %v738_v50 = vpop.f32.mrb[8].mxu1 }
 0x100   : > { %v2273_v43 = vpop.f32.mrb[11].mxu0  ;;  %v2278_v52 = vpop.f32.mrb[9].mxu1 }
 0x101   : > { %v741_v53 = vpop.f32.mrb[10].mxu1 }
 0x102   : > { %v2279_v54 = vpop.f32.mrb[11].mxu1 }
 0x105   : > { %v781_v47 = vpop.f32.mrb[12].mxu0 }
 0x106   : > { %v2284_v48 = vpop.f32.mrb[13].mxu0 }
 0x107   : > { %v784_v49 = vpop.f32.mrb[14].mxu0  ;;  %v824_v55 = vpop.f32.mrb[12].mxu1 }
 0x108   : > { %v2285_v51 = vpop.f32.mrb[15].mxu0  ;;  %v2290_v56 = vpop.f32.mrb[13].mxu1 }
 0x109   : > { %v827_v57 = vpop.f32.mrb[14].mxu1 }
 0x10a   : > { %v2291_v58 = vpop.f32.mrb[15].mxu1 }
 0x125   : > { %v2204_v59 = vpop.f32.mrb[16].mxu0 }
 0x126   : > { %v2205_v60 = vpop.f32.mrb[17].mxu0 }
 0x127   : > { %v2206_v61 = vadd.f32 %v2205_v60, %v2204_v59 }
 0x129   : > { %v2207_v62 = vpop.f32.mrb[18].mxu0  ;;  %v897_v63 = vadd.f32 %v2206_v61, %v523_v27 }
 0x12a   : > { %v2208_v2 = vpop.f32.mrb[19].mxu0 }
 0x12b   : > { %v2209_v4 = vadd.f32 %v2208_v2, %v2207_v62  ;;  %v936_v5 = vsel %vm935_vm2, %v897_v63, -inf }
 0x12c   : > { %937 = vmax.xlane.f32.xlu0 %v936_v5 }
 0x12d   : > { %v2210_v7 = vpop.f32.mrb[20].mxu0  ;;  %v902_v10 = vadd.f32 %v2209_v4, %v566_v34 }
 0x12e   : > { %v2211_v11 = vpop.f32.mrb[21].mxu0 }
 0x12f   : > { %v2212_v13 = vadd.f32 %v2211_v11, %v2210_v7  ;;  %v939_v14 = vsel %vm935_vm2, %v902_v10, -inf }
 0x130   : > { %940 = vmax.xlane.f32.xlu0 %v939_v14 }
 0x131   : > { %v2213_v16 = vpop.f32.mrb[22].mxu0  ;;  %v907_v17 = vadd.f32 %v2212_v13, %v609_v31 }
 0x132   : > { %v2214_v18 = vpop.f32.mrb[23].mxu0 }
 0x133   : > { %v2215_v19 = vadd.f32 %v2214_v18, %v2213_v16  ;;  %v942_v20 = vsel %vm935_vm2, %v907_v17, -inf }
 0x134   : > { %943 = vmax.xlane.f32.xlu1 %v942_v20 }
 0x135   : > { %v2216_v21 = vpop.f32.mrb[24].mxu0  ;;  %v912_v22 = vadd.f32 %v2215_v19, %v652_v42 }
 0x136   : > { %v2217_v23 = vpop.f32.mrb[25].mxu0 }
 0x137   : > { %v2218_v25 = vadd.f32 %v2217_v23, %v2216_v21  ;;  %v945_v26 = vsel %vm935_vm2, %v912_v22, -inf }
 0x138   : > { %946 = vmax.xlane.f32.xlu1 %v945_v26 }
 0x139   : > { %v2219_v27 = vpop.f32.mrb[26].mxu0  ;;  %v917_v28 = vadd.f32 %v2218_v25, %v695_v39 }
 0x13a   : > { %v2220_v29 = vpop.f32.mrb[27].mxu0 }
 0x13b   : > { %v2221_v30 = vadd.f32 %v2220_v29, %v2219_v27  ;;  %v948_v32 = vsel %vm935_vm2, %v917_v28, -inf }
 0x13c   : > { %949 = vmax.xlane.f32.xlu0 %v948_v32 }
 0x13d   : > { %v2222_v31 = vpop.f32.mrb[28].mxu0  ;;  %v922_v33 = vadd.f32 %v2221_v30, %v738_v50 }
 0x13e   : > { %v2223_v34 = vpop.f32.mrb[29].mxu0 }
 0x13f   : > { %v2224_v35 = vadd.f32 %v2223_v34, %v2222_v31  ;;  %v951_v36 = vsel %vm935_vm2, %v922_v33, -inf  ;;  %v1397_v34 = vsel %vm1045_vm3, %v2583_v9, 0  ;;  %v1262_v9 = vsel %vm1045_vm3, %v2552_v1, 0 }
 0x140   : > { %952 = vmax.xlane.f32.xlu1 %v951_v36  ;;  %2311 = vmatpush3.bf16.msra.mxu0 %v1397_v34  ;;  %v1487_v1 = vsel %vm1045_vm3, %v2610_v15, 0 }
 0x141   : > { %v2225_v37 = vpop.f32.mrb[30].mxu0  ;;  %v927_v38 = vadd.f32 %v2224_v35, %v781_v47  ;;  %2322 = vmatprep.subr.bf16.mxu0 %v2469_v0 }
 0x142   : > { %v2226_v40 = vpop.f32.mrb[31].mxu0 }
 0x143   : > { %v2227_v41 = vadd.f32 %v2226_v40, %v2225_v37  ;;  %v954_v42 = vsel %vm935_vm2, %v927_v38, -inf }
 0x144   : > { %955 = vmax.xlane.f32.xlu0 %v954_v42 }
 0x145   : > { %v932_v39 = vadd.f32 %v2227_v41, %v824_v55 }
 0x147   : > { %v957_v43 = vsel %vm935_vm2, %v932_v39, -inf }
 0x148   : > { %958 = vmax.xlane.f32.xlu1 %v957_v43 }
 0x1b9   : > { %v938_v44 = vpop.xlane.xlu0 %937 }
 0x1ba   : > { %v960_v45 = vsub.f32 %v897_v63, %v938_v44 }
 0x1bc   : > { %v968_v46 = vmul.f32 1.442695, %v960_v45 }
 0x1bd   : > { %v941_v48 = vpop.xlane.xlu0 %940 }
 0x1be   : > { %2413 = vpow2.f32 %v968_v46  ;;  %v961_v49 = vsub.f32 %v902_v10, %v941_v48 }
 0x1c0   : > { %v970_v50 = vmul.f32 1.442695, %v961_v49 }
 0x1c1   : > { %v944_v51 = vpop.xlane.xlu1 %943 }
 0x1c2   : > { %2415 = vpow2.f32 %v970_v50  ;;  %v962_v52 = vsub.f32 %v907_v17, %v944_v51 }
 0x1c4   : > { %v972_v47 = vmul.f32 1.442695, %v962_v52 }
 0x1c5   : > { %v947_v53 = vpop.xlane.xlu1 %946 }
 0x1c6   : > { %2417 = vpow2.f32 %v972_v47  ;;  %v963_v54 = vsub.f32 %v912_v22, %v947_v53 }
 0x1c8   : > { %v2701_v56 = vpop.eup %2413  ;;  %v974_v55 = vmul.f32 1.442695, %v963_v54 }
 0x1c9   : > { %v950_v57 = vpop.xlane.xlu0 %949  ;;  %v984_v58 = vsel %vm935_vm2, %v2701_v56, 0.0 }
 0x1ca   : > { %2419 = vpow2.f32 %v974_v55  ;;  %v964_v59 = vsub.f32 %v917_v28, %v950_v57  ;;  %985 = vadd.xlane.f32.xlu0 %v984_v58  ;;  %v472_v28 = vld [vmem:[%s403_s26] sm:$0xff] }
 0x1cb   : > { %v2111_v30 = vcombine.high %v472_v28, %v472_v28  ;;  %v2110_v32 = vcombine.low %v472_v28, %v472_v28  ;;  %v2822_v28 = vld [vmem:[%s2939_s5 + $0x8] sm:$0xff] }
 0x1cc   : > { %v2416_v60 = vpop.eup %2415  ;;  %v976_v61 = vmul.f32 1.442695, %v964_v59  ;;  %v1577_v59 = vsel %vm1045_vm3, %v2636_v24, 0  ;;  %v1307_v24 = vsel %vm1045_vm3, %v2572_v6, 0 }
 0x1cd   : > { %v953_v62 = vpop.xlane.xlu1 %952  ;;  %v987_v63 = vsel %vm935_vm2, %v2416_v60, 0.0  ;;  %2112 = vmatprep.subr.msk.bf16.mxu1 %vm1045_vm3, %v2111_v30  ;;  %v1047_v31 = vsel %vm1045_vm3, %v2110_v32, 0 }
 0x1ce   : > { %2421 = vpow2.f32 %v976_v61  ;;  %v965_v2 = vsub.f32 %v922_v33, %v953_v62  ;;  %988 = vadd.xlane.f32.xlu1 %v987_v63  ;;  %1053 = vmatpush1.bf16.msra.mxu1 %v1047_v31  ;;  %v2471_v33 = vmov 0  }
 0x1cf   : > { %2292 = vmatprep.subr.bf16.mxu1 %v2469_v0  ;;  %1084 = vmatprep.mubr.bf16.mxu1 %v2471_v33 }
 0x1d0   : > { %v2706_v4 = vpop.eup %2417  ;;  %v978_v5 = vmul.f32 1.442695, %v965_v2 }
 0x1d1   : > { %v956_v7 = vpop.xlane.xlu0 %955  ;;  %v990_v10 = vsel %vm935_vm2, %v2706_v4, 0.0 }
 0x1d2   : > { %2423 = vpow2.f32 %v978_v5  ;;  %v966_v11 = vsub.f32 %v927_v38, %v956_v7  ;;  %991 = vadd.xlane.f32.xlu0 %v990_v10  ;;  %v1352_v10 = vsel %vm1045_vm3, %v2558_v3, 0 }
 0x1d4   : > { %v2420_v13 = vpop.eup %2419  ;;  %v980_v14 = vmul.f32 1.442695, %v966_v11  ;;  %v1442_v11 = vsel %vm1045_vm3, %v2578_v8, 0  ;;  %v1620_v8 = vld [vmem:[%s2941_s7 + $0x8] sm:$0xff] }
 0x1d5   : > { %v959_v16 = vpop.xlane.xlu1 %958  ;;  %v993_v17 = vsel %vm935_vm2, %v2420_v13, 0.0 }
 0x1d6   : > { %2425 = vpow2.f32 %v980_v14  ;;  %v967_v18 = vsub.f32 %v932_v39, %v959_v16  ;;  %994 = vadd.xlane.f32.xlu1 %v993_v17  ;;  %v1622_v16 = vld [vmem:[%s2941_s7 + $0x18] sm:$0xff]  ;;  %v1619_v17 = vld [vmem:[%s2941_s7] sm:$0xff] }
 0x1d8   : > { %v2711_v19 = vpop.eup %2421  ;;  %v982_v20 = vmul.f32 1.442695, %v967_v18  ;;  %v1621_v18 = vld [vmem:[%s2941_s7 + $0x10] sm:$0xff] }
 0x1d9   : > { %v996_v21 = vsel %vm935_vm2, %v2711_v19, 0.0 }
 0x1da   : > { %2427 = vpow2.f32 %v982_v20  ;;  %997 = vadd.xlane.f32.xlu0 %v996_v21  ;;  %v1624_v20 = vld [vmem:[%s2941_s7 + $0x28] sm:$0xff]  ;;  %v1626_v21 = vld [vmem:[%s2941_s7 + $0x38] sm:$0xff] }
 0x1dc   : > { %v2715_v22 = vpop.eup %2423 }
 0x1dd   : > { %v999_v23 = vsel %vm935_vm2, %v2715_v22, 0.0 }
 0x1de   : > { %1000 = vadd.xlane.f32.xlu1 %v999_v23  ;;  %v1623_v23 = vld [vmem:[%s2941_s7 + $0x20] sm:$0xff] }
 0x1e0   : > { %v2719_v25 = vpop.eup %2425 }
 0x1e1   : > { %v1002_v26 = vsel %vm935_vm2, %v2719_v25, 0.0 }
 0x1e2   : > { %1003 = vadd.xlane.f32.xlu0 %v1002_v26 }
 0x1e4   : > { %v2727_v27 = vpop.eup %2427 }
 0x1e5   : > { %v1005_v29 = vsel %vm935_vm2, %v2727_v27, 0.0 }
 0x1e6   : > { %1006 = vadd.xlane.f32.xlu1 %v1005_v29 }
 0x257   : > { %v986_v35 = vpop.xlane.xlu0 %985 }
 0x258   : > { %2429 = vrcp.f32 %v986_v35 }
 0x25b   : > { %v989_v36 = vpop.xlane.xlu1 %988 }
 0x25c   : > { %2431 = vrcp.f32 %v989_v36 }
 0x25f   : > { %v992_v37 = vpop.xlane.xlu0 %991 }
 0x260   : > { %2433 = vrcp.f32 %v992_v37 }
 0x262   : > { %v2430_v40 = vpop.eup %2429 }
 0x263   : > { %v995_v38 = vpop.xlane.xlu1 %994  ;;  %v1016_v42 = vmul.f32 %v2430_v40, %v2701_v56 }
 0x264   : > { %2435 = vrcp.f32 %v995_v38 }
 0x265   : > { %v2148_v5 = vpack.c.bf16 %v1016_v42, %v1016_v42 }
 0x266   : > { %v2432_v41 = vpop.eup %2431 }
 0x267   : > { %v1017_v39 = vmul.f32 %v2432_v41, %v2416_v60  ;;  %v998_v43 = vpop.xlane.xlu0 %997 }
 0x268   : > { %2437 = vrcp.f32 %v998_v43 }
 0x269   : > { %v1024_v44 = vpack.c.bf16 %v1017_v39, %v1016_v42  ;;  %v2149_v7 = vpack.c.bf16 %v1017_v39, %v1017_v39 }
 0x26a   : > { %v2434_v46 = vpop.eup %2433 }
 0x26b   : > { %v1001_v45 = vpop.xlane.xlu1 %1000  ;;  %2113 = vmatmul.mubr.msk.bf16.vlgmr.msra.gmra.mrb[16].mxu1 %vm935_vm2, %v1024_v44  ;;  %v1018_v51 = vmul.f32 %v2434_v46, %v2706_v4 }
 0x26c   : > { %2439 = vrcp.f32 %v1001_v45  ;;  %2293 = vmatpush3.bf16.msra.mxu1 %v1262_v9  ;;  %1094 = vmatprep.mubr.bf16.mxu1 %v2471_v33 }
 0x26d   : > { %2298 = vmatprep.subr.bf16.mxu1 %v2469_v0  ;;  %v2150_v6 = vpack.c.bf16 %v1018_v51, %v1018_v51 }
 0x26e   : > { %v2436_v48 = vpop.eup %2435 }
 0x26f   : > { %v1019_v49 = vmul.f32 %v2436_v48, %v2420_v13  ;;  %v1004_v50 = vpop.xlane.xlu0 %1003  ;;  %v1532_v13 = vsel %vm1045_vm3, %v2602_v12, 0  ;;  %v2372_v12 = vpack.c.bf16 %v1622_v16, %v1620_v8 }
 0x270   : > { %2441 = vrcp.f32 %v1004_v50 }
 0x271   : > { %v2151_v52 = vpack.c.bf16 %v1019_v49, %v1019_v49  ;;  %v1025_v47 = vpack.c.bf16 %v1019_v49, %v1018_v51 }
 0x272   : > { %v2438_v54 = vpop.eup %2437 }
 0x273   : > { %2313 = vmatmul.mubr.msk.bf16.vlgmr.msra.gmra.mrb[32].mxu0 %vm935_vm2, %v2151_v52  ;;  %v1007_v53 = vpop.xlane.xlu1 %1006  ;;  %2114 = vmatmul.mubr.msk.bf16.gmra.mrb[20].mxu1 %vm935_vm2, %v1025_v47  ;;  %v1020_v55 = vmul.f32 %v2438_v54, %v2711_v19  ;;  %v2374_v19 = vpack.c.bf16 %v1621_v18, %v1619_v17 }
 0x274   : > { %2443 = vrcp.f32 %v1007_v53  ;;  %2323 = vmatpush3.bf16.msra.mxu0 %v1487_v1  ;;  %1104 = vmatprep.mubr.bf16.mxu1 %v2471_v33 }
 0x275   : > { %2324 = vmatprep.mubr.msk.bf16.mxu0 %vm2470_vm0, %v2469_v0  ;;  %2334 = vmatprep.subr.bf16.mxu0 %v2469_v0  ;;  %v2152_v3 = vpack.c.bf16 %v1020_v55, %v1020_v55 }
 0x276   : > { %v2440_v56 = vpop.eup %2439 }
 0x277   : > { %v1021_v15 = vmul.f32 %v2440_v56, %v2715_v22  ;;  %v2376_v22 = vpack.c.bf16 %v1626_v21, %v1624_v20 }
 0x279   : > { %v1026_v57 = vpack.c.bf16 %v1021_v15, %v1020_v55  ;;  %v2153_v58 = vpack.c.bf16 %v1021_v15, %v1021_v15 }
 0x27a   : > { %v2442_v60 = vpop.eup %2441 }
 0x27b   : > { %2115 = vmatmul.mubr.msk.bf16.gmra.mrb[24].mxu1 %vm935_vm2, %v1026_v57  ;;  %2325 = vmatmul.mubr.msk.bf16.vlgmr.msra.gmra.mrb[36].mxu0 %vm935_vm2, %v2153_v58  ;;  %v1022_v62 = vmul.f32 %v2442_v60, %v2719_v25  ;;  %v1625_v25 = vld [vmem:[%s2941_s7 + $0x30] sm:$0xff] }
 0x27c   : > { %2335 = vmatpush3.bf16.msra.mxu0 %v1577_v59  ;;  %1114 = vmatprep.mubr.bf16.mxu1 %v2471_v33  ;;  %v2378_v26 = vpack.c.bf16 %v1625_v25, %v1623_v23 }
 0x27d   : > { %2336 = vmatprep.mubr.msk.bf16.mxu0 %vm2470_vm0, %v2469_v0  ;;  %v2154_v14 = vpack.c.bf16 %v1022_v62, %v1022_v62  ;;  %2373 = vmatprep.subr.bf16.mxu0 %v2372_v12 }
 0x27e   : > { %v2444_v61 = vpop.eup %2443 }
 0x27f   : > { %v1023_v63 = vmul.f32 %v2444_v61, %v2727_v27  ;;  %v2817_v27 = vld [vmem:[%s2939_s5] sm:$0xff] }
 0x281   : > { %v1027_v2 = vpack.c.bf16 %v1023_v63, %v1022_v62  ;;  %v2155_v4 = vpack.c.bf16 %v1023_v63, %v1023_v63 }
 0x283   : > { %2116 = vmatmul.mubr.msk.bf16.gmra.mrb[28].mxu1 %vm935_vm2, %v1027_v2  ;;  %2337 = vmatmul.mubr.msk.bf16.vlgmr.msra.gmra.mrb[40].mxu0 %vm935_vm2, %v2155_v4 }
 0x284   : > { %2294 = vmatprep.mubr.msk.bf16.mxu1 %vm2470_vm0, %v2469_v0  ;;  %1715 = vmatprep.mubr.f32.mxu0 %v2469_v0 }
 0x285   : > { %2375 = vmatpush1.bf16.msra.mxu0 %v2374_v19 }
 0x286   : > { %2377 = vmatprep.subr.bf16.mxu0 %v2376_v22 }
 0x289   : > { %2379 = vmatpush1.bf16.msra.mxu0 %v2378_v26 }
 0x28b   : > { %2295 = vmatmul.mubr.msk.bf16.vlgmr.msra.gmra.mrb[32].mxu1 %vm935_vm2, %v2148_v5 }
 0x28c   : > { %2299 = vmatpush3.bf16.msra.mxu1 %v1307_v24  ;;  %2300 = vmatprep.mubr.msk.bf16.mxu1 %vm2470_vm0, %v2469_v0 }
 0x28d   : > { %2304 = vmatprep.subr.bf16.mxu1 %v2469_v0 }
 0x293   : > { %2301 = vmatmul.mubr.msk.bf16.vlgmr.msra.gmra.mrb[36].mxu1 %vm935_vm2, %v2149_v7 }
 0x294   : > { %2305 = vmatpush3.bf16.msra.mxu1 %v1352_v10  ;;  %2306 = vmatprep.mubr.msk.bf16.mxu1 %vm2470_vm0, %v2469_v0 }
 0x295   : > { %2316 = vmatprep.subr.bf16.mxu1 %v2469_v0 }
 0x29b   : > { %2307 = vmatmul.mubr.msk.bf16.vlgmr.msra.gmra.mrb[40].mxu1 %vm935_vm2, %v2150_v6 }
 0x29c   : > { %2317 = vmatpush3.bf16.msra.mxu1 %v1442_v11  ;;  %2318 = vmatprep.mubr.msk.bf16.mxu1 %vm2470_vm0, %v2469_v0 }
 0x29d   : > { %2328 = vmatprep.subr.bf16.mxu1 %v2469_v0 }
 0x2a3   : > { %2319 = vmatmul.mubr.msk.bf16.vlgmr.msra.gmra.mrb[44].mxu1 %vm935_vm2, %v2152_v3 }
 0x2a4   : > { %2329 = vmatpush3.bf16.msra.mxu1 %v1532_v13  ;;  %2330 = vmatprep.mubr.msk.bf16.mxu1 %vm2470_vm0, %v2469_v0 }
 0x2a5   : > { %2380 = vmatprep.subr.bf16.mxu1 %v2372_v12 }
 0x2ab   : > { %2331 = vmatmul.mubr.msk.bf16.vlgmr.msra.gmra.mrb[48].mxu1 %vm935_vm2, %v2154_v14 }
 0x2ac   : > { %1733 = vmatprep.mubr.f32.mxu1 %v2469_v0  ;;  %2382 = vmatpush1.bf16.msra.mxu1 %v2374_v19 }
 0x2ad   : > { %2381 = vmatprep.subr.bf16.mxu1 %v2376_v22 }
 0x2b0   : > { %2383 = vmatpush1.bf16.msra.mxu1 %v2378_v26 }
 0x33e   : > { %v1086_v29 = vpop.f32.mrb[16].mxu1 }
 0x33f   : > { %v1127_v30 = vmul.f32 %v2817_v27, %v1086_v29  ;;  %v1088_v32 = vpop.f32.mrb[17].mxu1 }
 0x340   : > { %v1128_v31 = vmul.f32 %v2822_v28, %v1088_v32  ;;  %v1090_v33 = vpop.f32.mrb[18].mxu1 }
 0x341   : > { %v1143_v34 = vrot.slane %v1127_v30, 4  ;;  %v1129_v35 = vmul.f32 %v2817_v27, %v1090_v33  ;;  %v1092_v36 = vpop.f32.mrb[19].mxu1 }
 0x342   : > { %v1149_v37 = vrot.slane %v1128_v31, 4  ;;  %v1130_v38 = vmul.f32 %v2822_v28, %v1092_v36 }
 0x343   : > { %v1144_v40 = vadd.f32 %v1143_v34, %v1127_v30  ;;  %v1155_v41 = vrot.slane %v1129_v35, 4 }
 0x344   : > { %v1150_v42 = vadd.f32 %v1149_v37, %v1128_v31  ;;  %v1161_v39 = vrot.slane %v1130_v38, 4 }
 0x345   : > { %v1145_v43 = vrot.slane %v1144_v40, 2  ;;  %v1156_v9 = vadd.f32 %v1155_v41, %v1129_v35 }
 0x346   : > { %v1151_v44 = vrot.slane %v1150_v42, 2  ;;  %v1162_v45 = vadd.f32 %v1161_v39, %v1130_v38  ;;  %v1096_v46 = vpop.f32.mrb[20].mxu1  ;;  %v1433_v48 = vpop.f32.mrb[32].mxu0 }
 0x347   : > { %v1146_v49 = vadd.f32 %v1145_v43, %v1144_v40  ;;  %v1157_v50 = vrot.slane %v1156_v9, 2  ;;  %v1131_v51 = vmul.f32 %v2817_v27, %v1096_v46  ;;  %v1098_v52 = vpop.f32.mrb[21].mxu1  ;;  %v2314_v47 = vpop.f32.mrb[33].mxu0  ;;  %2136 = vmatmul.mubr.msk.f32.vlgmr.msra.gmra.mrb[52].mxu1 %vm482_vm1, %v1433_v48 }
 0x348   : > { %v1152_v1 = vadd.f32 %v1151_v44, %v1150_v42  ;;  %v1163_v53 = vrot.slane %v1162_v45, 2  ;;  %v1132_v54 = vmul.f32 %v2822_v28, %v1098_v52  ;;  %v1100_v56 = vpop.f32.mrb[22].mxu1  ;;  %v1436_v55 = vpop.f32.mrb[34].mxu0  ;;  %1739 = vmatprep.mubr.f32.mxu1 %v2469_v0 }
 0x349   : > { %v1147_v15 = vrot.slane %v1146_v49, 1  ;;  %v1158_v57 = vadd.f32 %v1157_v50, %v1156_v9  ;;  %v1167_v58 = vrot.slane %v1131_v51, 4  ;;  %v1133_v59 = vmul.f32 %v2817_v27, %v1100_v56  ;;  %v1102_v60 = vpop.f32.mrb[23].mxu1  ;;  %v2315_v61 = vpop.f32.mrb[35].mxu0 }
 0x34a   : > { %v1153_v62 = vrot.slane %v1152_v1, 1  ;;  %v1164_v63 = vadd.f32 %v1163_v53, %v1162_v45  ;;  %v1173_v2 = vrot.slane %v1132_v54, 4  ;;  %v1134_v4 = vmul.f32 %v2822_v28, %v1102_v60 }
 0x34b   : > { %v1159_v24 = vrot.slane %v1158_v57, 1  ;;  %v1168_v5 = vadd.f32 %v1167_v58, %v1131_v51  ;;  %v1179_v7 = vrot.slane %v1133_v59, 4  ;;  %v1148_v3 = vadd.f32 %v1147_v15, %v1146_v49 }
 0x34c   : > { %v1165_v10 = vrot.slane %v1164_v63, 1  ;;  %v1174_v6 = vadd.f32 %v1173_v2, %v1132_v54  ;;  %v1185_v11 = vrot.slane %v1134_v4, 4  ;;  %v1154_v16 = vadd.f32 %v1153_v62, %v1152_v1 }
 0x34d   : > { %v1160_v13 = vadd.f32 %v1159_v24, %v1158_v57  ;;  %v1169_v14 = vrot.slane %v1168_v5, 2  ;;  %v1180_v8 = vadd.f32 %v1179_v7, %v1133_v59 }
 0x34e   : > { %v1166_v12 = vadd.f32 %v1165_v10, %v1164_v63  ;;  %v1175_v17 = vrot.slane %v1174_v6, 2  ;;  %v1186_v18 = vadd.f32 %v1185_v11, %v1134_v4  ;;  %v1106_v19 = vpop.f32.mrb[24].mxu1  ;;  %v2834_v20 = vpop.f32.mrb[36].mxu0 }
 0x34f   : > { %v1895_v21 = vsel %vm1894_vm4, %v1160_v13, %v1148_v3  ;;  %v1170_v22 = vadd.f32 %v1169_v14, %v1168_v5  ;;  %v1181_v23 = vrot.slane %v1180_v8, 2  ;;  %v1135_v25 = vmul.f32 %v2817_v27, %v1106_v19  ;;  %v1108_v26 = vpop.f32.mrb[25].mxu1  ;;  %v2326_v29 = vpop.f32.mrb[37].mxu0 }
 0x350   : > { %v1908_v30 = vsel %vm1894_vm4, %v1166_v12, %v1154_v16  ;;  %v1176_v32 = vadd.f32 %v1175_v17, %v1174_v6  ;;  %v1187_v31 = vrot.slane %v1186_v18, 2  ;;  %v1136_v33 = vmul.f32 %v2822_v28, %v1108_v26  ;;  %v1110_v34 = vpop.f32.mrb[26].mxu1  ;;  %v1526_v35 = vpop.f32.mrb[38].mxu0 }
 0x351   : > { %v1171_v36 = vrot.slane %v1170_v22, 1  ;;  %v1182_v37 = vadd.f32 %v1181_v23, %v1180_v8  ;;  %v1191_v38 = vrot.slane %v1135_v25, 4  ;;  %v1137_v40 = vmul.f32 %v2817_v27, %v1110_v34  ;;  %v1112_v41 = vpop.f32.mrb[27].mxu1  ;;  %v2327_v42 = vpop.f32.mrb[39].mxu0 }
 0x352   : > { %v1177_v39 = vrot.slane %v1176_v32, 1  ;;  %v1188_v43 = vadd.f32 %v1187_v31, %v1186_v18  ;;  %v1197_v9 = vrot.slane %v1136_v33, 4  ;;  %v1138_v44 = vmul.f32 %v2822_v28, %v1112_v41 }
 0x353   : > { %v1172_v45 = vadd.f32 %v1171_v36, %v1170_v22  ;;  %v1183_v46 = vrot.slane %v1182_v37, 1  ;;  %v1192_v48 = vadd.f32 %v1191_v38, %v1135_v25  ;;  %v1203_v49 = vrot.slane %v1137_v40, 4 }
 0x354   : > { %v1178_v50 = vadd.f32 %v1177_v39, %v1176_v32  ;;  %v1189_v51 = vrot.slane %v1188_v43, 1  ;;  %v1198_v52 = vadd.f32 %v1197_v9, %v1136_v33  ;;  %v1209_v47 = vrot.slane %v1138_v44, 4 }
 0x355   : > { %v1897_v1 = vsel %vm1896_vm5, %v1172_v45, %v1895_v21  ;;  %v1184_v53 = vadd.f32 %v1183_v46, %v1182_v37  ;;  %v1193_v54 = vrot.slane %v1192_v48, 2  ;;  %v1204_v56 = vadd.f32 %v1203_v49, %v1137_v40 }
 0x356   : > { %v1909_v55 = vsel %vm1896_vm5, %v1178_v50, %v1908_v30  ;;  %v1190_v15 = vadd.f32 %v1189_v51, %v1188_v43  ;;  %v1199_v57 = vrot.slane %v1198_v52, 2  ;;  %v1210_v58 = vadd.f32 %v1209_v47, %v1138_v44  ;;  %v1116_v59 = vpop.f32.mrb[28].mxu1  ;;  %v2844_v60 = vpop.f32.mrb[40].mxu0 }
 0x357   : > { %v1899_v61 = vsel %vm1898_vm6, %v1184_v53, %v1897_v1  ;;  %v1194_v62 = vadd.f32 %v1193_v54, %v1192_v48  ;;  %v1205_v63 = vrot.slane %v1204_v56, 2  ;;  %v1139_v2 = vmul.f32 %v2817_v27, %v1116_v59  ;;  %v1118_v4 = vpop.f32.mrb[29].mxu1  ;;  %v2338_v24 = vpop.f32.mrb[41].mxu0 }
 0x358   : > { %v1910_v5 = vsel %vm1898_vm6, %v1190_v15, %v1909_v55  ;;  %v1200_v7 = vadd.f32 %v1199_v57, %v1198_v52  ;;  %v1211_v10 = vrot.slane %v1210_v58, 2  ;;  %v1140_v6 = vmul.f32 %v2822_v28, %v1118_v4  ;;  %v1120_v11 = vpop.f32.mrb[30].mxu1  ;;  %v1616_v3 = vpop.f32.mrb[42].mxu0 }
 0x359   : > { %v1195_v13 = vrot.slane %v1194_v62, 1  ;;  %v1206_v14 = vadd.f32 %v1205_v63, %v1204_v56  ;;  %v1215_v8 = vrot.slane %v1139_v2, 4  ;;  %v1141_v16 = vmul.f32 %v2817_v27, %v1120_v11  ;;  %v1122_v12 = vpop.f32.mrb[31].mxu1  ;;  %v2339_v17 = vpop.f32.mrb[43].mxu0 }
 0x35a   : > { %v1201_v18 = vrot.slane %v1200_v7, 1  ;;  %v1212_v19 = vadd.f32 %v1211_v10, %v1210_v58  ;;  %v1221_v21 = vrot.slane %v1140_v6, 4  ;;  %v1142_v22 = vmul.f32 %v2822_v28, %v1122_v12 }
 0x35b   : > { %v1196_v23 = vadd.f32 %v1195_v13, %v1194_v62  ;;  %v1207_v25 = vrot.slane %v1206_v14, 1  ;;  %v1216_v26 = vadd.f32 %v1215_v8, %v1139_v2  ;;  %v1227_v29 = vrot.slane %v1141_v16, 4 }
 0x35c   : > { %v1202_v30 = vadd.f32 %v1201_v18, %v1200_v7  ;;  %v1213_v32 = vrot.slane %v1212_v19, 1  ;;  %v1222_v31 = vadd.f32 %v1221_v21, %v1140_v6  ;;  %v1233_v33 = vrot.slane %v1142_v22, 4  ;;  %v2891_v21 = vld [vmem:[%s2940_s6 + $0x8] sm:$0xff] }
 0x35d   : > { %v1901_v34 = vsel %vm1900_vm7, %v1196_v23, %v1899_v61  ;;  %v1208_v35 = vadd.f32 %v1207_v25, %v1206_v14  ;;  %v1217_v36 = vrot.slane %v1216_v26, 2  ;;  %v1228_v27 = vadd.f32 %v1227_v29, %v1141_v16 }
 0x35e   : > { %v1911_v37 = vsel %vm1900_vm7, %v1202_v30, %v1910_v5  ;;  %v1214_v38 = vadd.f32 %v1213_v32, %v1212_v19  ;;  %v1223_v40 = vrot.slane %v1222_v31, 2  ;;  %v1234_v41 = vadd.f32 %v1233_v33, %v1142_v22  ;;  %v1298_v42 = vpop.f32.mrb[32].mxu1  ;;  %v2886_v19 = vld [vmem:[%s2940_s6] sm:$0xff] }
 0x35f   : > { %v1903_v28 = vsel %vm1902_vm8, %v1208_v35, %v1901_v34  ;;  %v1218_v39 = vadd.f32 %v1217_v36, %v1216_v26  ;;  %v1229_v43 = vrot.slane %v1228_v27, 2  ;;  %v2296_v9 = vpop.f32.mrb[33].mxu1  ;;  %2133 = vmatmul.mubr.msk.f32.vlgmr.msra.gmra.mrb[44].mxu0 %vm482_vm1, %v1298_v42 }
 0x360   : > { %v1912_v44 = vsel %vm1902_vm8, %v1214_v38, %v1911_v37  ;;  %v1224_v45 = vadd.f32 %v1223_v40, %v1222_v31  ;;  %v1235_v46 = vrot.slane %v1234_v41, 2  ;;  %v1301_v48 = vpop.f32.mrb[34].mxu1  ;;  %1721 = vmatprep.mubr.f32.mxu0 %v2469_v0 }
 0x361   : > { %v1219_v49 = vrot.slane %v1218_v39, 1  ;;  %v1230_v50 = vadd.f32 %v1229_v43, %v1228_v27  ;;  %v2297_v51 = vpop.f32.mrb[35].mxu1 }
 0x362   : > { %v1225_v52 = vrot.slane %v1224_v45, 1  ;;  %v1236_v47 = vadd.f32 %v1235_v46, %v1234_v41 }
 0x363   : > { %v1220_v1 = vadd.f32 %v1219_v49, %v1218_v39  ;;  %v1231_v53 = vrot.slane %v1230_v50, 1 }
 0x364   : > { %v1226_v54 = vadd.f32 %v1225_v52, %v1224_v45  ;;  %v1237_v56 = vrot.slane %v1236_v47, 1 }
 0x365   : > { %v1905_v55 = vsel %vm1904_vm9, %v1220_v1, %v1903_v28  ;;  %v1232_v15 = vadd.f32 %v1231_v53, %v1230_v50 }
 0x366   : > { %v1913_v57 = vsel %vm1904_vm9, %v1226_v54, %v1912_v44  ;;  %v1238_v58 = vadd.f32 %v1237_v56, %v1236_v47  ;;  %v1343_v59 = vpop.f32.mrb[36].mxu1 }
 0x367   : > { %v1907_v61 = vsel %vm1906_vm10, %v1232_v15, %v1905_v55  ;;  %v2302_v62 = vpop.f32.mrb[37].mxu1  ;;  %2134 = vmatmul.mubr.msk.f32.gmra.mrb[46].mxu0 %vm482_vm1, %v1343_v59 }
 0x368   : > { %1949 = vst [vmem:[%s2864_s15] sm:$0xff] %v1907_v61  ;;  %v1914_v63 = vsel %vm1906_vm10, %v1238_v58, %v1913_v57  ;;  %v1346_v2 = vpop.f32.mrb[38].mxu1  ;;  %1727 = vmatprep.mubr.f32.mxu0 %v2469_v0 }
 0x369   : > { %1950 = vst [vmem:[%s2864_s15 + $0x8] sm:$0xff] %v1914_v63  ;;  %v2303_v4 = vpop.f32.mrb[39].mxu1 }
 0x36e   : > { %v1388_v24 = vpop.f32.mrb[40].mxu1 }
 0x36f   : > { %v2308_v5 = vpop.f32.mrb[41].mxu1  ;;  %2135 = vmatmul.mubr.msk.f32.gmra.mrb[48].mxu0 %vm482_vm1, %v1388_v24 }
 0x370   : > { %v1391_v7 = vpop.f32.mrb[42].mxu1 }
 0x371   : > { %v2309_v10 = vpop.f32.mrb[43].mxu1 }
 0x376   : > { %v1478_v6 = vpop.f32.mrb[44].mxu1 }
 0x377   : > { %v2320_v11 = vpop.f32.mrb[45].mxu1  ;;  %2137 = vmatmul.mubr.msk.f32.gmra.mrb[54].mxu1 %vm482_vm1, %v1478_v6 }
 0x378   : > { %v1481_v3 = vpop.f32.mrb[46].mxu1  ;;  %1745 = vmatprep.mubr.f32.mxu1 %v2469_v0 }
 0x379   : > { %v2321_v13 = vpop.f32.mrb[47].mxu1 }
 0x37b   : > { %2138 = vmatmul.mubr.msk.f32.gmra.mrb[56].mxu1 %vm482_vm1, %v2834_v20 }
 0x37c   : > { %1751 = vmatprep.mubr.f32.mxu1 %v2469_v0 }
 0x37e   : > { %v1568_v14 = vpop.f32.mrb[48].mxu1 }
 0x37f   : > { %v2332_v8 = vpop.f32.mrb[49].mxu1  ;;  %2139 = vmatmul.mubr.msk.f32.gmra.mrb[58].mxu1 %vm482_vm1, %v1568_v14 }
 0x380   : > { %v1571_v16 = vpop.f32.mrb[50].mxu1  ;;  %1757 = vmatprep.mubr.f32.mxu1 %v2469_v0 }
 0x381   : > { %v2333_v12 = vpop.f32.mrb[51].mxu1 }
 0x383   : > { %2140 = vmatmul.mubr.msk.f32.gmra.mrb[60].mxu1 %vm482_vm1, %v2844_v60 }
 0x41a   : > { %v1735_v17 = vpop.f32.mrb[52].mxu1 }
 0x41b   : > { %v1737_v18 = vpop.f32.mrb[53].mxu1  ;;  %v1772_v29 = vmul.f32 %v2886_v19, %v1735_v17 }
 0x41c   : > { %v1773_v32 = vmul.f32 %v2891_v21, %v1737_v18 }
 0x41d   : > { %v1818_v36 = vrot.slane %v1772_v29, 4 }
 0x41e   : > { %v1824_v38 = vrot.slane %v1773_v32, 4 }
 0x41f   : > { %v1819_v39 = vadd.f32 %v1818_v36, %v1772_v29 }
 0x420   : > { %v1825_v44 = vadd.f32 %v1824_v38, %v1773_v32 }
 0x421   : > { %v1820_v47 = vrot.slane %v1819_v39, 2 }
 0x422   : > { %v1826_v56 = vrot.slane %v1825_v44, 2 }
 0x423   : > { %v1821_v63 = vadd.f32 %v1820_v47, %v1819_v39 }
 0x424   : > { %v1827_v5 = vadd.f32 %v1826_v56, %v1825_v44 }
 0x425   : > { %v1822_v16 = vrot.slane %v1821_v63, 1 }
 0x426   : > { %v1828_v18 = vrot.slane %v1827_v5, 1 }
 0x427   : > { %v1823_v32 = vadd.f32 %v1822_v16, %v1821_v63 }
 0x432   : > { %v1717_v20 = vpop.f32.mrb[44].mxu0 }
 0x433   : > { %v1766_v22 = vmul.f32 %v2886_v19, %v1717_v20  ;;  %v1719_v0 = vpop.f32.mrb[45].mxu0 }
 0x434   : > { %v1767_v23 = vmul.f32 %v2891_v21, %v1719_v0 }
 0x435   : > { %v1782_v25 = vrot.slane %v1766_v22, 4 }
 0x436   : > { %v1788_v60 = vrot.slane %v1767_v23, 4 }
 0x437   : > { %v1783_v26 = vadd.f32 %v1782_v25, %v1766_v22 }
 0x438   : > { %v1789_v30 = vadd.f32 %v1788_v60, %v1767_v23 }
 0x439   : > { %v1784_v33 = vrot.slane %v1783_v26, 2 }
 0x43a   : > { %v1723_v31 = vpop.f32.mrb[46].mxu0  ;;  %v1790_v27 = vrot.slane %v1789_v30, 2 }
 0x43b   : > { %v1768_v34 = vmul.f32 %v2886_v19, %v1723_v31  ;;  %v1725_v35 = vpop.f32.mrb[47].mxu0  ;;  %v1785_v42 = vadd.f32 %v1784_v33, %v1783_v26 }
 0x43c   : > { %v1769_v37 = vmul.f32 %v2891_v21, %v1725_v35  ;;  %v1791_v43 = vadd.f32 %v1790_v27, %v1789_v30  ;;  %v1829_v35 = vadd.f32 %v1828_v18, %v1827_v5 }
 0x43d   : > { %v1794_v40 = vrot.slane %v1768_v34, 4  ;;  %v1786_v49 = vrot.slane %v1785_v42, 1 }
 0x43e   : > { %v1800_v41 = vrot.slane %v1769_v37, 4  ;;  %v1792_v1 = vrot.slane %v1791_v43, 1 }
 0x43f   : > { %v1795_v28 = vadd.f32 %v1794_v40, %v1768_v34  ;;  %v1787_v59 = vadd.f32 %v1786_v49, %v1785_v42 }
 0x440   : > { %v1801_v9 = vadd.f32 %v1800_v41, %v1769_v37  ;;  %v1793_v2 = vadd.f32 %v1792_v1, %v1791_v43 }
 0x441   : > { %v1796_v45 = vrot.slane %v1795_v28, 2 }
 0x442   : > { %v1802_v46 = vrot.slane %v1801_v9, 2  ;;  %v1729_v48 = vpop.f32.mrb[48].mxu0 }
 0x443   : > { %v1797_v50 = vadd.f32 %v1796_v45, %v1795_v28  ;;  %v1770_v51 = vmul.f32 %v2886_v19, %v1729_v48  ;;  %v1731_v52 = vpop.f32.mrb[49].mxu0 }
 0x444   : > { %v1803_v53 = vadd.f32 %v1802_v46, %v1801_v9  ;;  %v1771_v54 = vmul.f32 %v2891_v21, %v1731_v52 }
 0x445   : > { %v1798_v55 = vrot.slane %v1797_v50, 1  ;;  %v1806_v15 = vrot.slane %v1770_v51, 4 }
 0x446   : > { %v1804_v57 = vrot.slane %v1803_v53, 1  ;;  %v1812_v58 = vrot.slane %v1771_v54, 4 }
 0x447   : > { %v1799_v61 = vadd.f32 %v1798_v55, %v1797_v50  ;;  %v1807_v62 = vadd.f32 %v1806_v15, %v1770_v51 }
 0x448   : > { %v1805_v4 = vadd.f32 %v1804_v57, %v1803_v53  ;;  %v1813_v24 = vadd.f32 %v1812_v58, %v1771_v54 }
 0x449   : > { %v1933_v7 = vsel %vm1894_vm4, %v1799_v61, %v1787_v59  ;;  %v1808_v10 = vrot.slane %v1807_v62, 2 }
 0x44a   : > { %v1940_v6 = vsel %vm1894_vm4, %v1805_v4, %v1793_v2  ;;  %v1814_v11 = vrot.slane %v1813_v24, 2  ;;  %v1741_v3 = vpop.f32.mrb[54].mxu1 }
 0x44b   : > { %v1809_v13 = vadd.f32 %v1808_v10, %v1807_v62  ;;  %v1774_v14 = vmul.f32 %v2886_v19, %v1741_v3  ;;  %v1743_v8 = vpop.f32.mrb[55].mxu1 }
 0x44c   : > { %v1815_v12 = vadd.f32 %v1814_v11, %v1813_v24  ;;  %v1775_v17 = vmul.f32 %v2891_v21, %v1743_v8 }
 0x44d   : > { %v1810_v20 = vrot.slane %v1809_v13, 1  ;;  %v1830_v22 = vrot.slane %v1774_v14, 4 }
 0x44e   : > { %v1816_v0 = vrot.slane %v1815_v12, 1  ;;  %v1836_v23 = vrot.slane %v1775_v17, 4  ;;  %v1747_v25 = vpop.f32.mrb[56].mxu1 }
 0x44f   : > { %v1811_v60 = vadd.f32 %v1810_v20, %v1809_v13  ;;  %v1831_v26 = vadd.f32 %v1830_v22, %v1774_v14  ;;  %v1776_v29 = vmul.f32 %v2886_v19, %v1747_v25  ;;  %v1749_v30 = vpop.f32.mrb[57].mxu1 }
 0x450   : > { %v1817_v31 = vadd.f32 %v1816_v0, %v1815_v12  ;;  %v1837_v33 = vadd.f32 %v1836_v23, %v1775_v17  ;;  %v1777_v34 = vmul.f32 %v2891_v21, %v1749_v30 }
 0x451   : > { %v1934_v36 = vsel %vm1896_vm5, %v1811_v60, %v1933_v7  ;;  %v1832_v27 = vrot.slane %v1831_v26, 2  ;;  %v1842_v37 = vrot.slane %v1776_v29, 4 }
 0x452   : > { %v1941_v38 = vsel %vm1896_vm5, %v1817_v31, %v1940_v6  ;;  %v1935_v40 = vsel %vm1898_vm6, %v1823_v32, %v1934_v36  ;;  %v1838_v41 = vrot.slane %v1837_v33, 2  ;;  %v1848_v42 = vrot.slane %v1777_v34, 4  ;;  %v1753_v28 = vpop.f32.mrb[58].mxu1 }
 0x453   : > { %v1833_v39 = vadd.f32 %v1832_v27, %v1831_v26  ;;  %v1942_v43 = vsel %vm1898_vm6, %v1829_v35, %v1941_v38  ;;  %v1843_v9 = vadd.f32 %v1842_v37, %v1776_v29  ;;  %v1778_v44 = vmul.f32 %v2886_v19, %v1753_v28  ;;  %v1755_v45 = vpop.f32.mrb[59].mxu1 }
 0x454   : > { %v1839_v46 = vadd.f32 %v1838_v41, %v1837_v33  ;;  %v1849_v48 = vadd.f32 %v1848_v42, %v1777_v34  ;;  %v1779_v49 = vmul.f32 %v2891_v21, %v1755_v45 }
 0x455   : > { %v1834_v50 = vrot.slane %v1833_v39, 1  ;;  %v1844_v51 = vrot.slane %v1843_v9, 2  ;;  %v1854_v52 = vrot.slane %v1778_v44, 4 }
 0x456   : > { %v1840_v47 = vrot.slane %v1839_v46, 1  ;;  %v1850_v1 = vrot.slane %v1849_v48, 2  ;;  %v1860_v53 = vrot.slane %v1779_v49, 4  ;;  %v1759_v54 = vpop.f32.mrb[60].mxu1 }
 0x457   : > { %v1835_v56 = vadd.f32 %v1834_v50, %v1833_v39  ;;  %v1845_v55 = vadd.f32 %v1844_v51, %v1843_v9  ;;  %v1855_v15 = vadd.f32 %v1854_v52, %v1778_v44  ;;  %v1780_v57 = vmul.f32 %v2886_v19, %v1759_v54  ;;  %v1761_v58 = vpop.f32.mrb[61].mxu1 }
 0x458   : > { %v1841_v59 = vadd.f32 %v1840_v47, %v1839_v46  ;;  %v1851_v61 = vadd.f32 %v1850_v1, %v1849_v48  ;;  %v1861_v62 = vadd.f32 %v1860_v53, %v1779_v49  ;;  %v1781_v63 = vmul.f32 %v2891_v21, %v1761_v58 }
 0x459   : > { %v1936_v2 = vsel %vm1900_vm7, %v1835_v56, %v1935_v40  ;;  %v1846_v4 = vrot.slane %v1845_v55, 1  ;;  %v1856_v24 = vrot.slane %v1855_v15, 2  ;;  %v1866_v5 = vrot.slane %v1780_v57, 4 }
 0x45a   : > { %v1943_v7 = vsel %vm1900_vm7, %v1841_v59, %v1942_v43  ;;  %v1852_v10 = vrot.slane %v1851_v61, 1  ;;  %v1862_v6 = vrot.slane %v1861_v62, 2  ;;  %v1872_v11 = vrot.slane %v1781_v63, 4 }
 0x45b   : > { %v1847_v3 = vadd.f32 %v1846_v4, %v1845_v55  ;;  %v1857_v13 = vadd.f32 %v1856_v24, %v1855_v15  ;;  %v1867_v14 = vadd.f32 %v1866_v5, %v1780_v57 }
 0x45c   : > { %v1853_v19 = vadd.f32 %v1852_v10, %v1851_v61  ;;  %v1863_v8 = vadd.f32 %v1862_v6, %v1861_v62  ;;  %v1873_v16 = vadd.f32 %v1872_v11, %v1781_v63 }
 0x45d   : > { %v1937_v12 = vsel %vm1902_vm8, %v1847_v3, %v1936_v2  ;;  %v1858_v17 = vrot.slane %v1857_v13, 1  ;;  %v1868_v21 = vrot.slane %v1867_v14, 2 }
 0x45e   : > { %v1944_v18 = vsel %vm1902_vm8, %v1853_v19, %v1943_v7  ;;  %v1864_v20 = vrot.slane %v1863_v8, 1  ;;  %v1874_v22 = vrot.slane %v1873_v16, 2 }
 0x45f   : > { %v1859_v0 = vadd.f32 %v1858_v17, %v1857_v13  ;;  %v1869_v23 = vadd.f32 %v1868_v21, %v1867_v14 }
 0x460   : > { %v1865_v25 = vadd.f32 %v1864_v20, %v1863_v8  ;;  %v1875_v60 = vadd.f32 %v1874_v22, %v1873_v16 }
 0x461   : > { %v1938_v26 = vsel %vm1904_vm9, %v1859_v0, %v1937_v12  ;;  %v1870_v29 = vrot.slane %v1869_v23, 1 }
 0x462   : > { %v1945_v30 = vsel %vm1904_vm9, %v1865_v25, %v1944_v18  ;;  %v1876_v32 = vrot.slane %v1875_v60, 1 }
 0x463   : > { %v1871_v31 = vadd.f32 %v1870_v29, %v1869_v23 }
 0x464   : > { %v1877_v33 = vadd.f32 %v1876_v32, %v1875_v60 }
 0x465   : > { %v1939_v34 = vsel %vm1906_vm10, %v1871_v31, %v1938_v26 }
 0x466   : > { %1951 = vst [vmem:[%s2864_s15 + $0x10] sm:$0xff] %v1939_v34  ;;  %v1946_v35 = vsel %vm1906_vm10, %v1877_v33, %v1945_v30 }
 0x467   : > { %1952 = vst [vmem:[%s2864_s15 + $0x18] sm:$0xff] %v1946_v35 }
 0x468 PF: > { %s18_s29 = sadd.s32 1, %s2467_s29   ;;  %s2943_s27 = smov %s2463_s28 }
 0x469   : > { %p15_p5 = scmp.ge.s32.totalorder %s18_s29, 4   ;;  %s2944_s28 = smov %s2946_s30 }
 0x46b   :  { %17 = sbr.rel (!%p15_p5) target bundleno = 2 (0x2), region = 91 }

// kernel: structure_module.5
= control target key start
LH: loop header
LB: loop body
LE: loop exit
PB: predicated region body
PF: predicated region fallthrough
CT: control target
= control target key end

     0   :  { %vm288_vm0 = vcmask 261120   ;;  %vm750_vm1 = vcmask 48128   ;;  %s1426_s2 = inlined_call_operand.vmem [shape: f32[512,32], index: 2, kind: input, shape index: {}]   ;;  %s1427_s0 = inlined_call_operand.vmem [shape: f32[16,512], index: 0, kind: input, shape index: {}]   ;;  %s1428_s3 = inlined_call_operand.vmem [shape: f32[1,32], index: 3, kind: input, shape index: {}]   ;;  %s1429_s1 = inlined_call_operand.vmem [shape: f32[16,32], index: 1, kind: input, shape index: {}]   ;;  %s1430_s6 = inlined_call_operand.vmem [shape: f32[32,32], index: 6, kind: input, shape index: {}]   ;;  %s1431_s8 = inlined_call_operand.vmem [shape: f32[32,32], index: 8, kind: input, shape index: {}]   ;;  %s1432_s4 = inlined_call_operand.vmem [shape: f32[1,32], index: 4, kind: input, shape index: {}]   ;;  %s1433_s5 = inlined_call_operand.vmem [shape: f32[1,32], index: 5, kind: input, shape index: {}]   ;;  %s1434_s10 = inlined_call_operand.vmem [shape: f32[32,32], index: 10, kind: input, shape index: {}]   ;;  %s1435_s7 = inlined_call_operand.vmem [shape: f32[1,32], index: 7, kind: input, shape index: {}]   ;;  %s1436_s9 = inlined_call_operand.vmem [shape: f32[1,32], index: 9, kind: input, shape index: {}]   ;;  %s1437_s11 = inlined_call_operand.vmem [shape: f32[1,32], index: 11, kind: input, shape index: {}]   ;;  %s1438_s14 = inlined_call_operand.vmem [shape: f32[32,6], index: 14, kind: input, shape index: {}]   ;;  %s1439_s12 = inlined_call_operand.vmem [shape: f32[1,32], index: 12, kind: input, shape index: {}]   ;;  %s1440_s13 = inlined_call_operand.vmem [shape: f32[1,32], index: 13, kind: input, shape index: {}]   ;;  %s1441_s15 = inlined_call_operand.vmem [shape: f32[1,6], index: 15, kind: input, shape index: {}]   ;;  %s1442_s16 = inlined_call_operand.vmem [shape: f32[16,6], index: 16, kind: output, shape index: {}]  }
   0x1   :  { %1444 = sst [smem:[#allocation2_spill]] %s1426_s2 }
   0x2   :  { %s1445_s23 = sld [smem:[#allocation2_spill]] }
   0x8   :  { %v79_v0 = vld [vmem:[%s1445_s23 + $0x80] sm:$0xff]  ;;  %v80_v1 = vld [vmem:[%s1445_s23 + $0x88] sm:$0xff]  ;;  %v81_v11 = vld [vmem:[%s1445_s23 + $0x90] sm:$0xff] }
   0x9   :  { %v63_v2 = vld [vmem:[%s1445_s23] sm:$0xff]  ;;  %v918_v3 = vpack.c.bf16 %v80_v1, %v79_v0  ;;  %v64_v4 = vld [vmem:[%s1445_s23 + $0x8] sm:$0xff]  ;;  %v82_v13 = vld [vmem:[%s1445_s23 + $0x98] sm:$0xff] }
   0xa   :  { %v111_v5 = vld [vmem:[%s1445_s23 + $0x180] sm:$0xff]  ;;  %v112_v6 = vld [vmem:[%s1445_s23 + $0x188] sm:$0xff]  ;;  %v920_v7 = vpack.c.bf16 %v64_v4, %v63_v2  ;;  %v65_v14 = vld [vmem:[%s1445_s23 + $0x10] sm:$0xff]  ;;  %v922_v16 = vpack.c.bf16 %v82_v13, %v81_v11 }
   0xb   :  { %v950_v8 = vpack.c.bf16 %v112_v6, %v111_v5  ;;  %v95_v9 = vld [vmem:[%s1445_s23 + $0x100] sm:$0xff]  ;;  %v96_v10 = vld [vmem:[%s1445_s23 + $0x108] sm:$0xff]  ;;  %919 = vmatprep.subr.bf16.mxu0 %v918_v3  ;;  %v66_v15 = vld [vmem:[%s1445_s23 + $0x18] sm:$0xff] }
   0xc   :  { %v952_v12 = vpack.c.bf16 %v96_v10, %v95_v9  ;;  %921 = vmatpush3.bf16.msra.mxu0 %v920_v7  ;;  %v924_v17 = vpack.c.bf16 %v66_v15, %v65_v14  ;;  %v113_v18 = vld [vmem:[%s1445_s23 + $0x190] sm:$0xff]  ;;  %v114_v19 = vld [vmem:[%s1445_s23 + $0x198] sm:$0xff]  ;;  %v83_v23 = vld [vmem:[%s1445_s23 + $0xa0] sm:$0xff] }
   0xd   :  { %951 = vmatprep.subr.bf16.mxu1 %v950_v8  ;;  %v97_v20 = vld [vmem:[%s1445_s23 + $0x110] sm:$0xff]  ;;  %v954_v21 = vpack.c.bf16 %v114_v19, %v113_v18  ;;  %v98_v22 = vld [vmem:[%s1445_s23 + $0x118] sm:$0xff]  ;;  %v84_v24 = vld [vmem:[%s1445_s23 + $0xa8] sm:$0xff]  ;;  %923 = vmatprep.subr.bf16.mxu0 %v922_v16 }
   0xe   :  { %953 = vmatpush3.bf16.msra.mxu1 %v952_v12  ;;  %v956_v25 = vpack.c.bf16 %v98_v22, %v97_v20  ;;  %v926_v26 = vpack.c.bf16 %v84_v24, %v83_v23  ;;  %v67_v27 = vld [vmem:[%s1445_s23 + $0x20] sm:$0xff]  ;;  %v68_v28 = vld [vmem:[%s1445_s23 + $0x28] sm:$0xff]  ;;  %v85_v35 = vld [vmem:[%s1445_s23 + $0xb0] sm:$0xff] }
   0xf   :  { %v115_v29 = vld [vmem:[%s1445_s23 + $0x1a0] sm:$0xff]  ;;  %955 = vmatprep.subr.bf16.mxu1 %v954_v21  ;;  %v116_v30 = vld [vmem:[%s1445_s23 + $0x1a8] sm:$0xff]  ;;  %v928_v33 = vpack.c.bf16 %v68_v28, %v67_v27  ;;  %v86_v36 = vld [vmem:[%s1445_s23 + $0xb8] sm:$0xff] }
  0x10   :  { %v99_v31 = vld [vmem:[%s1445_s23 + $0x120] sm:$0xff]  ;;  %v100_v32 = vld [vmem:[%s1445_s23 + $0x128] sm:$0xff]  ;;  %925 = vmatpush3.bf16.msra.mxu0 %v924_v17  ;;  %v958_v34 = vpack.c.bf16 %v116_v30, %v115_v29  ;;  %v69_v37 = vld [vmem:[%s1445_s23 + $0x30] sm:$0xff]  ;;  %v930_v39 = vpack.c.bf16 %v86_v36, %v85_v35 }
  0x11   :  { %927 = vmatprep.subr.bf16.mxu0 %v926_v26  ;;  %v960_v38 = vpack.c.bf16 %v100_v32, %v99_v31  ;;  %v70_v40 = vld [vmem:[%s1445_s23 + $0x38] sm:$0xff]  ;;  %v117_v41 = vld [vmem:[%s1445_s23 + $0x1b0] sm:$0xff]  ;;  %v87_v46 = vld [vmem:[%s1445_s23 + $0xc0] sm:$0xff] }
  0x12   :  { %957 = vmatpush3.bf16.msra.mxu1 %v956_v25  ;;  %v118_v42 = vld [vmem:[%s1445_s23 + $0x1b8] sm:$0xff]  ;;  %v101_v44 = vld [vmem:[%s1445_s23 + $0x130] sm:$0xff]  ;;  %v88_v47 = vld [vmem:[%s1445_s23 + $0xc8] sm:$0xff]  ;;  %v932_v48 = vpack.c.bf16 %v70_v40, %v69_v37 }
  0x13   :  { %959 = vmatprep.subr.bf16.mxu1 %v958_v34  ;;  %v962_v43 = vpack.c.bf16 %v118_v42, %v117_v41  ;;  %v102_v45 = vld [vmem:[%s1445_s23 + $0x138] sm:$0xff]  ;;  %v119_v49 = vld [vmem:[%s1445_s23 + $0x1c0] sm:$0xff]  ;;  %v120_v50 = vld [vmem:[%s1445_s23 + $0x1c8] sm:$0xff]  ;;  %v934_v52 = vpack.c.bf16 %v88_v47, %v87_v46 }
  0x14   :  { %929 = vmatpush3.bf16.msra.mxu0 %v928_v33  ;;  %v964_v51 = vpack.c.bf16 %v102_v45, %v101_v44  ;;  %v71_v53 = vld [vmem:[%s1445_s23 + $0x40] sm:$0xff]  ;;  %v72_v54 = vld [vmem:[%s1445_s23 + $0x48] sm:$0xff]  ;;  %v966_v56 = vpack.c.bf16 %v120_v50, %v119_v49  ;;  %v89_v58 = vld [vmem:[%s1445_s23 + $0xd0] sm:$0xff] }
  0x15   :  { %931 = vmatprep.subr.bf16.mxu0 %v930_v39  ;;  %v103_v55 = vld [vmem:[%s1445_s23 + $0x140] sm:$0xff]  ;;  %v104_v57 = vld [vmem:[%s1445_s23 + $0x148] sm:$0xff]  ;;  %v90_v59 = vld [vmem:[%s1445_s23 + $0xd8] sm:$0xff]  ;;  %v936_v62 = vpack.c.bf16 %v72_v54, %v71_v53 }
  0x16   :  { %961 = vmatpush3.bf16.msra.mxu1 %v960_v38  ;;  %v121_v60 = vld [vmem:[%s1445_s23 + $0x1d0] sm:$0xff]  ;;  %v122_v61 = vld [vmem:[%s1445_s23 + $0x1d8] sm:$0xff]  ;;  %v968_v63 = vpack.c.bf16 %v104_v57, %v103_v55  ;;  %v938_v0 = vpack.c.bf16 %v90_v59, %v89_v58  ;;  %v91_v6 = vld [vmem:[%s1445_s23 + $0xe0] sm:$0xff] }
  0x17   :  { %963 = vmatprep.subr.bf16.mxu1 %v962_v43  ;;  %v73_v1 = vld [vmem:[%s1445_s23 + $0x50] sm:$0xff]  ;;  %v74_v2 = vld [vmem:[%s1445_s23 + $0x58] sm:$0xff]  ;;  %v970_v4 = vpack.c.bf16 %v122_v61, %v121_v60  ;;  %v92_v7 = vld [vmem:[%s1445_s23 + $0xe8] sm:$0xff] }
  0x18   :  { %933 = vmatpush3.bf16.msra.mxu0 %v932_v48  ;;  %v105_v3 = vld [vmem:[%s1445_s23 + $0x150] sm:$0xff]  ;;  %v106_v5 = vld [vmem:[%s1445_s23 + $0x158] sm:$0xff]  ;;  %v123_v8 = vld [vmem:[%s1445_s23 + $0x1e0] sm:$0xff]  ;;  %v940_v10 = vpack.c.bf16 %v74_v2, %v73_v1  ;;  %v942_v14 = vpack.c.bf16 %v92_v7, %v91_v6 }
  0x19   :  { %935 = vmatprep.subr.bf16.mxu0 %v934_v52  ;;  %v124_v9 = vld [vmem:[%s1445_s23 + $0x1e8] sm:$0xff]  ;;  %v75_v11 = vld [vmem:[%s1445_s23 + $0x60] sm:$0xff]  ;;  %v972_v13 = vpack.c.bf16 %v106_v5, %v105_v3  ;;  %v93_v19 = vld [vmem:[%s1445_s23 + $0xf0] sm:$0xff] }
  0x1a   :  { %965 = vmatpush3.bf16.msra.mxu1 %v964_v51  ;;  %v76_v12 = vld [vmem:[%s1445_s23 + $0x68] sm:$0xff]  ;;  %v107_v15 = vld [vmem:[%s1445_s23 + $0x160] sm:$0xff]  ;;  %v974_v18 = vpack.c.bf16 %v124_v9, %v123_v8  ;;  %v94_v20 = vld [vmem:[%s1445_s23 + $0xf8] sm:$0xff] }
  0x1b   :  { %967 = vmatprep.subr.bf16.mxu1 %v966_v56  ;;  %v108_v16 = vld [vmem:[%s1445_s23 + $0x168] sm:$0xff]  ;;  %v58_v21 = vld [vmem:[%s1427_s0 + $0x18] sm:$0xff]  ;;  %v125_v22 = vld [vmem:[%s1445_s23 + $0x1f0] sm:$0xff]  ;;  %v944_v24 = vpack.c.bf16 %v76_v12, %v75_v11  ;;  %v946_v26 = vpack.c.bf16 %v94_v20, %v93_v19 }
  0x1c   :  { %937 = vmatpush3.bf16.msra.mxu0 %v936_v62  ;;  %v56_v17 = vld [vmem:[%s1427_s0 + $0x8] sm:$0xff]  ;;  %v126_v23 = vld [vmem:[%s1445_s23 + $0x1f8] sm:$0xff]  ;;  %273 = vmatprep.mubr.f32.mxu1 %v58_v21  ;;  %v976_v25 = vpack.c.bf16 %v108_v16, %v107_v15  ;;  %v77_v27 = vld [vmem:[%s1445_s23 + $0x70] sm:$0xff] }
  0x1d   :  { %939 = vmatprep.subr.bf16.mxu0 %v938_v0  ;;  %198 = vmatprep.mubr.f32.mxu0 %v56_v17  ;;  %v78_v28 = vld [vmem:[%s1445_s23 + $0x78] sm:$0xff]  ;;  %v978_v29 = vpack.c.bf16 %v126_v23, %v125_v22  ;;  %v109_v30 = vld [vmem:[%s1445_s23 + $0x170] sm:$0xff]  ;;  %v55_v34 = vld [vmem:[%s1427_s0] sm:$0xff] }
  0x1e   :  { %969 = vmatpush3.bf16.msra.mxu1 %v968_v63  ;;  %v110_v31 = vld [vmem:[%s1445_s23 + $0x178] sm:$0xff]  ;;  %v948_v32 = vpack.c.bf16 %v78_v28, %v77_v27  ;;  %v57_v35 = vld [vmem:[%s1427_s0 + $0x10] sm:$0xff]  ;;  %v60_v36 = vld [vmem:[%s1427_s0 + $0x28] sm:$0xff] }
  0x1f   :  { %971 = vmatprep.subr.bf16.mxu1 %v970_v4  ;;  %v980_v33 = vpack.c.bf16 %v110_v31, %v109_v30  ;;  %v62_v37 = vld [vmem:[%s1427_s0 + $0x38] sm:$0xff]  ;;  %v59_v38 = vld [vmem:[%s1427_s0 + $0x20] sm:$0xff]  ;;  %v61_v39 = vld [vmem:[%s1427_s0 + $0x30] sm:$0xff] }
  0x20   :  { %941 = vmatpush3.bf16.msra.mxu0 %v940_v10  ;;  %v757_v41 = vld [vmem:[%s1428_s3] ss:$0 sm:$0xff]  ;;  %v54_v58 = vld [vmem:[%s1429_s1 + $0x8] sm:$0xff]  ;;  %v334_v12 = vld [vmem:[%s1430_s6 + $0x10] sm:$0xff] }
  0x21   :  { %943 = vmatprep.subr.bf16.mxu0 %v942_v14  ;;  %v53_v51 = vld [vmem:[%s1429_s1] sm:$0xff]  ;;  %v333_v10 = vld [vmem:[%s1430_s6 + $0x8] sm:$0xff] }
  0x22   :  { %973 = vmatpush3.bf16.msra.mxu1 %v972_v13  ;;  %v332_v9 = vld [vmem:[%s1430_s6] sm:$0xff]  ;;  %v335_v13 = vld [vmem:[%s1430_s6 + $0x18] sm:$0xff]  ;;  %v427_v16 = vld [vmem:[%s1431_s8 + $0x8] sm:$0xff] }
  0x23   :  { %975 = vmatprep.subr.bf16.mxu1 %v974_v18  ;;  %v982_v11 = vpack.c.bf16 %v333_v10, %v332_v9  ;;  %v986_v14 = vpack.c.bf16 %v335_v13, %v334_v12  ;;  %v426_v15 = vld [vmem:[%s1431_s8] sm:$0xff]  ;;  %v659_v13 = vld [vmem:[%s1438_s14 + $0x8] sm:$0xff] }
  0x24   :  { %945 = vmatpush3.bf16.msra.mxu0 %v944_v24  ;;  %v990_v17 = vpack.c.bf16 %v427_v16, %v426_v15  ;;  %v759_v27 = vld [vmem:[%s1433_s5] ss:$0 sm:$0xff]  ;;  %v660_v15 = vld [vmem:[%s1438_s14 + $0x10] sm:$0xff]  ;;  %v661_v16 = vld [vmem:[%s1438_s14 + $0x18] sm:$0xff] }
  0x25   :  { %947 = vmatprep.subr.bf16.mxu0 %v946_v26  ;;  %v658_v12 = vld [vmem:[%s1438_s14] sm:$0xff] }
  0x26   :  { %977 = vmatpush3.bf16.msra.mxu1 %v976_v25  ;;  %v758_v25 = vld [vmem:[%s1432_s4] ss:$0 sm:$0xff] }
  0x27   :  { %979 = vmatprep.subr.bf16.mxu1 %v978_v29 }
  0x28   :  { %949 = vmatpush3.bf16.msra.mxu0 %v948_v32 }
  0x29   :  { %983 = vmatprep.subr.bf16.mxu0 %v982_v11 }
  0x2a   :  { %981 = vmatpush3.bf16.msra.mxu1 %v980_v33 }
  0x2b   :  { %199 = vmatmul.mubr.f32.vlgmr.msra.gmra.mrb[0].mxu0 %v55_v34  ;;  %991 = vmatprep.subr.bf16.mxu1 %v990_v17  ;;  %v428_v34 = vld [vmem:[%s1431_s8 + $0x10] sm:$0xff] }
  0x2c   :  { %203 = vmatprep.mubr.f32.mxu0 %v60_v36  ;;  %985 = vmatpush3.bf16.msra.mxu0 %v982_v11 }
  0x2d   :  { %274 = vmatmul.mubr.f32.vlgmr.msra.gmra.mrb[0].mxu1 %v57_v35  ;;  %987 = vmatprep.subr.bf16.mxu0 %v986_v14  ;;  %v429_v35 = vld [vmem:[%s1431_s8 + $0x18] sm:$0xff] }
  0x2e   :  { %278 = vmatprep.mubr.f32.mxu1 %v62_v37  ;;  %993 = vmatpush3.bf16.msra.mxu1 %v990_v17  ;;  %v994_v36 = vpack.c.bf16 %v429_v35, %v428_v34  ;;  %v520_v37 = vld [vmem:[%s1434_s10] sm:$0xff]  ;;  %v1010_v17 = vpack.c.bf16 %v661_v16, %v660_v15 }
  0x2f   :  { %204 = vmatmul.mubr.f32.gmra.mrb[2].mxu0 %v59_v38  ;;  %v521_v38 = vld [vmem:[%s1434_s10 + $0x8] sm:$0xff]  ;;  %v771_v34 = vld [vmem:[%s1441_s15] ss:$0 sm:$0xff] }
  0x30   :  { %989 = vmatpush3.bf16.msra.mxu0 %v986_v14  ;;  %995 = vmatprep.subr.bf16.mxu1 %v994_v36  ;;  %v1006_v14 = vpack.c.bf16 %v659_v13, %v658_v12 }
  0x31   :  { %279 = vmatmul.mubr.f32.gmra.mrb[2].mxu1 %v61_v39  ;;  %v998_v39 = vpack.c.bf16 %v521_v38, %v520_v37 }
  0x32   :  { %997 = vmatpush3.bf16.msra.mxu1 %v994_v36 }
  0x33   :  { %999 = vmatprep.subr.bf16.mxu0 %v998_v39  ;;  %1007 = vmatprep.subr.bf16.mxu1 %v1006_v14 }
  0xfe   :  { %v806_v40 = vpop.f32.mrb[0].mxu0 }
  0xff   :  { %v807_v42 = vpop.f32.mrb[1].mxu0 }
 0x100   :  { %v844_v43 = vpop.f32.mrb[0].mxu1  ;;  %v808_v44 = vadd.f32 %v807_v42, %v806_v40  ;;  %v760_v40 = vld [vmem:[%s1435_s7] ss:$0 sm:$0xff] }
 0x101   :  { %v845_v45 = vpop.f32.mrb[1].mxu1 }
 0x102   :  { %v846_v46 = vadd.f32 %v845_v45, %v844_v43  ;;  %v201_v47 = vadd.f32 %v808_v44, %v757_v41  ;;  %v809_v48 = vpop.f32.mrb[2].mxu0 }
 0x103   :  { %v810_v49 = vpop.f32.mrb[3].mxu0 }
 0x104   :  { %v847_v50 = vpop.f32.mrb[2].mxu1  ;;  %v276_v52 = vadd.f32 %v846_v46, %v201_v47  ;;  %v811_v53 = vadd.f32 %v810_v49, %v809_v48  ;;  %v522_v47 = vld [vmem:[%s1434_s10 + $0x10] sm:$0xff]  ;;  %v523_v48 = vld [vmem:[%s1434_s10 + $0x18] sm:$0xff] }
 0x105   :  { %v848_v54 = vpop.f32.mrb[3].mxu1  ;;  %v1002_v49 = vpack.c.bf16 %v523_v48, %v522_v47 }
 0x106   :  { %v849_v55 = vadd.f32 %v848_v54, %v847_v50  ;;  %v206_v56 = vadd.f32 %v811_v53, %v757_v41  ;;  %v284_v57 = vadd.f32 %v276_v52, %v53_v51  ;;  %v763_v50 = vld [vmem:[%s1436_s9] ss:$0 sm:$0xff] }
 0x108   :  { %v281_v59 = vadd.f32 %v849_v55, %v206_v56  ;;  %v289_v60 = vsel %vm288_vm0, %v284_v57, 0.0 }
 0x109   :  { %290 = vadd.xlane.f32.xlu0 %v289_v60 }
 0x10a   :  { %v285_v61 = vadd.f32 %v281_v59, %v54_v58 }
 0x10c   :  { %v292_v62 = vsel %vm288_vm0, %v285_v61, 0.0 }
 0x10d   :  { %293 = vadd.xlane.f32.xlu0 %v292_v62 }
 0x196   :  { %v291_v63 = vpop.xlane.xlu0 %290 }
 0x197   :  { %v296_v0 = vmul.f32 0.03125, %v291_v63 }
 0x199   :  { %v298_v1 = vsub.f32 %v284_v57, %v296_v0  ;;  %v766_v57 = vld [vmem:[%s1437_s11] ss:$0 sm:$0xff] }
 0x19a   :  { %v294_v2 = vpop.xlane.xlu0 %293 }
 0x19b   :  { %v297_v3 = vmul.f32 0.03125, %v294_v2  ;;  %v300_v4 = vmul.f32 %v298_v1, %v298_v1 }
 0x19d   :  { %v299_v5 = vsub.f32 %v285_v61, %v297_v3  ;;  %v302_v6 = vsel %vm288_vm0, %v300_v4, 0.0 }
 0x19e   :  { %303 = vadd.xlane.f32.xlu1 %v302_v6 }
 0x19f   :  { %v301_v7 = vmul.f32 %v299_v5, %v299_v5 }
 0x1a1   :  { %v305_v8 = vsel %vm288_vm0, %v301_v7, 0.0 }
 0x1a2   :  { %306 = vadd.xlane.f32.xlu1 %v305_v8 }
 0x22b   :  { %v304_v18 = vpop.xlane.xlu1 %303 }
 0x22c   :  { %v308_v19 = vmul.f32 0.03125, %v304_v18 }
 0x22e   :  { %v310_v20 = vadd.f32 1e-05, %v308_v19 }
 0x22f   :  { %v307_v21 = vpop.xlane.xlu1 %306 }
 0x230   :  { %1014 = vrsqrt.f32 %v310_v20  ;;  %v309_v22 = vmul.f32 0.03125, %v307_v21 }
 0x232   :  { %v311_v23 = vadd.f32 1e-05, %v309_v22 }
 0x234   :  { %1016 = vrsqrt.f32 %v311_v23 }
 0x23a   :  { %v1015_v24 = vpop.eup %1014 }
 0x23b   :  { %v314_v26 = vmul.f32 %v1015_v24, %v298_v1 }
 0x23d   :  { %v322_v28 = vmul.f32 %v758_v25, %v314_v26 }
 0x23e   :  { %v1017_v29 = vpop.eup %1016 }
 0x23f   :  { %v315_v30 = vmul.f32 %v1017_v29, %v299_v5  ;;  %v330_v31 = vadd.f32 %v759_v27, %v322_v28  ;;  %v770_v29 = vld [vmem:[%s1440_s13] ss:$0 sm:$0xff] }
 0x241   :  { %v323_v32 = vmul.f32 %v758_v25, %v315_v30  ;;  %882 = vmatprep.mubr.msk.f32.mxu0 %vm288_vm0, %v330_v31  ;;  %v769_v25 = vld [vmem:[%s1439_s12] ss:$0 sm:$0xff] }
 0x243   :  { %v331_v33 = vadd.f32 %v759_v27, %v323_v32 }
 0x245   :  { %883 = vmatmul.mubr.msk.f32.vlgmr.msra.gmra.mrb[4].mxu0 %vm288_vm0, %v331_v33 }
 0x246   :  { %1001 = vmatpush3.bf16.msra.mxu0 %v998_v39 }
 0x247   :  { %1003 = vmatprep.subr.bf16.mxu0 %v1002_v49 }
 0x24a   :  { %1005 = vmatpush3.bf16.msra.mxu0 %v1002_v49 }
 0x318   :  { %v884_v41 = vpop.f32.mrb[4].mxu0 }
 0x319   :  { %v421_v42 = vadd.f32 %v884_v41, %v760_v40  ;;  %v415_v43 = vpop.f32.mrb[5].mxu0 }
 0x31a   :  { %v416_v44 = vadd.f32 %v760_v40, %v415_v43 }
 0x31b   :  { %v425_v46 = vmax.f32 %v421_v42, 0.0 }
 0x31c   :  { %v424_v45 = vmax.f32 %v416_v44, 0.0 }
 0x31e   :  { %893 = vmatprep.mubr.msk.f32.mxu1 %vm288_vm0, %v424_v45 }
 0x31f   :  { %894 = vmatmul.mubr.msk.f32.vlgmr.msra.gmra.mrb[4].mxu1 %vm288_vm0, %v425_v46 }
 0x320   :  { %1009 = vmatpush3.bf16.msra.mxu1 %v1006_v14 }
 0x321   :  { %1011 = vmatprep.subr.bf16.mxu1 %v1010_v17 }
 0x324   :  { %1013 = vmatpush3.bf16.msra.mxu1 %v1010_v17 }
 0x3f2   :  { %v895_v51 = vpop.f32.mrb[4].mxu1 }
 0x3f3   :  { %v515_v52 = vadd.f32 %v895_v51, %v763_v50  ;;  %v509_v53 = vpop.f32.mrb[5].mxu1 }
 0x3f4   :  { %v510_v54 = vadd.f32 %v763_v50, %v509_v53 }
 0x3f5   :  { %v519_v56 = vmax.f32 %v515_v52, 0.0 }
 0x3f6   :  { %v518_v55 = vmax.f32 %v510_v54, 0.0 }
 0x3f8   :  { %904 = vmatprep.mubr.msk.f32.mxu0 %vm288_vm0, %v518_v55 }
 0x3f9   :  { %905 = vmatmul.mubr.msk.f32.vlgmr.msra.gmra.mrb[6].mxu0 %vm288_vm0, %v519_v56 }
 0x4cc   :  { %v906_v58 = vpop.f32.mrb[6].mxu0 }
 0x4cd   :  { %v609_v59 = vadd.f32 %v906_v58, %v766_v57  ;;  %v603_v60 = vpop.f32.mrb[7].mxu0 }
 0x4ce   :  { %v604_v61 = vadd.f32 %v766_v57, %v603_v60 }
 0x4cf   :  { %v613_v62 = vadd.f32 %v609_v59, %v331_v33 }
 0x4d0   :  { %v612_v63 = vadd.f32 %v604_v61, %v330_v31 }
 0x4d1   :  { %v619_v0 = vsel %vm288_vm0, %v613_v62, 0.0 }
 0x4d2   :  { %620 = vadd.xlane.f32.xlu1 %v619_v0  ;;  %v616_v1 = vsel %vm288_vm0, %v612_v63, 0.0 }
 0x4d3   :  { %617 = vadd.xlane.f32.xlu0 %v616_v1 }
 0x55f   :  { %v621_v2 = vpop.xlane.xlu1 %620 }
 0x560   :  { %v623_v3 = vmul.f32 0.03125, %v621_v2  ;;  %v618_v4 = vpop.xlane.xlu0 %617 }
 0x561   :  { %v622_v5 = vmul.f32 0.03125, %v618_v4 }
 0x562   :  { %v625_v6 = vsub.f32 %v613_v62, %v623_v3 }
 0x563   :  { %v624_v7 = vsub.f32 %v612_v63, %v622_v5 }
 0x564   :  { %v627_v8 = vmul.f32 %v625_v6, %v625_v6 }
 0x565   :  { %v626_v9 = vmul.f32 %v624_v7, %v624_v7 }
 0x566   :  { %v631_v10 = vsel %vm288_vm0, %v627_v8, 0.0 }
 0x567   :  { %632 = vadd.xlane.f32.xlu1 %v631_v10  ;;  %v628_v11 = vsel %vm288_vm0, %v626_v9, 0.0 }
 0x568   :  { %629 = vadd.xlane.f32.xlu0 %v628_v11 }
 0x5f4   :  { %v633_v18 = vpop.xlane.xlu1 %632 }
 0x5f5   :  { %v635_v19 = vmul.f32 0.03125, %v633_v18  ;;  %v630_v20 = vpop.xlane.xlu0 %629 }
 0x5f6   :  { %v634_v21 = vmul.f32 0.03125, %v630_v20 }
 0x5f7   :  { %v637_v22 = vadd.f32 1e-05, %v635_v19 }
 0x5f8   :  { %v636_v23 = vadd.f32 1e-05, %v634_v21 }
 0x5f9   :  { %1018 = vrsqrt.f32 %v637_v22 }
 0x5fa   :  { %1020 = vrsqrt.f32 %v636_v23 }
 0x603   :  { %v1019_v24 = vpop.eup %1018 }
 0x604   :  { %v1021_v26 = vpop.eup %1020  ;;  %v641_v27 = vmul.f32 %v1019_v24, %v625_v6 }
 0x605   :  { %v640_v28 = vmul.f32 %v1021_v26, %v624_v7 }
 0x606   :  { %v649_v30 = vmul.f32 %v769_v25, %v641_v27 }
 0x607   :  { %v648_v31 = vmul.f32 %v769_v25, %v640_v28 }
 0x608   :  { %v657_v33 = vadd.f32 %v770_v29, %v649_v30 }
 0x609   :  { %v656_v32 = vadd.f32 %v770_v29, %v648_v31 }
 0x60b   :  { %915 = vmatprep.mubr.msk.f32.mxu1 %vm288_vm0, %v656_v32 }
 0x60c   :  { %916 = vmatmul.mubr.msk.f32.vlgmr.msra.gmra.mrb[6].mxu1 %vm288_vm0, %v657_v33 }
 0x6df   :  { %v917_v35 = vpop.f32.mrb[6].mxu1 }
 0x6e0   :  { %v747_v36 = vadd.f32 %v917_v35, %v771_v34  ;;  %v741_v37 = vpop.f32.mrb[7].mxu1 }
 0x6e1   :  { %v742_v38 = vadd.f32 %v771_v34, %v741_v37 }
 0x6e2   :  { %752 = vst.msk [vmem:[%s1442_s16 + $0x8] sm:$0xff] %vm750_vm1, %v747_v36 }
 0x6e3   :  { %751 = vst.msk [vmem:[%s1442_s16] sm:$0xff] %vm750_vm1, %v742_v38 }

</bundles_post_ra>
